<compile_context>
chip_gen: v6e
topology: v6e:2x2x1
jax: 0.10.0
libtpu: 0.0.40
codegen_flags: <defaults>
</compile_context>

<pallas_src>
import functools

import jax
import jax.numpy as jnp
from jax import lax
from jax.experimental import pallas as pl
from jax.experimental.pallas import tpu as pltpu

# Model dims (from the PyTorch module).
H1, H2, H3 = 100, 60, 30
DIN, DMID, DOUT = 2, 10, 2

# Packed-layout constants.
WCAT = 256                      # padded width of [h1 | h2 | h3 | 0-pad]
L1, L2, L3 = 0, H1, H1 + H2     # lane offsets 0, 100, 160 inside the concat
XCOLS = 8                       # padded augmented-input columns (2 x + 3 bias indicators)
NOUT_PAD = 128                  # padded output lanes (real outputs in [:2])


# ----------------------------------------------------------------------------
# Pallas kernel: full forward pass (3 RNN layers wavefronted + fused heads).
# ----------------------------------------------------------------------------
def _rnn_stack_kernel(x_ref, wrec_ref, wmisc_ref, out_ref, u_sc, h_sc, *, T, Bp):
    f32 = jnp.float32
    S = T + 2  # wavefront super-steps

    # 1) All layer-1 input projections + every bias (with its ramp-up mask) in
    #    ONE batched GEMM, off the serial critical path.
    #    u[s] = [ x[s]@Wih1 + b1 | b2*(s>=1) | b3*(s>=2) | 0 ]
    u_sc[...] = jnp.dot(x_ref[...], wmisc_ref[0:XCOLS, :],
                        preferred_element_type=f32)

    # 2) Wavefront recurrence: one fused bf16 (Bp,256)@(256,256) MXU push per
    #    super-step, f32 accumulate, f32 add+tanh, one full-lane store.
    w_rec = wrec_ref[...]  # (256, 256) bf16, loop-invariant (hoisted)

    def step(s, h):
        row = pl.multiple_of(s * Bp, Bp)
        z = u_sc[pl.ds(row, Bp), :] + jnp.dot(h, w_rec,
                                              preferred_element_type=f32)
        h_new = jnp.tanh(z)                       # f32 VPU/EUP math
        h_sc[pl.ds(row, Bp), :] = h_new           # unmasked (8, 256) store
        return h_new.astype(jnp.bfloat16)         # bf16 MXU operand next step

    lax.fori_loop(0, S, step, jnp.zeros((Bp, WCAT), jnp.bfloat16), unroll=True)

    # 3) Both Linear heads, pre-composed into one affine map (nonzero only on
    #    the h3 lanes), applied once to the whole slab: one GEMM + one store.
    w_head = wmisc_ref[XCOLS:XCOLS + WCAT, 0:NOUT_PAD]                # (256, 128)
    bo = wmisc_ref[XCOLS + WCAT:XCOLS + WCAT + 1, 0:NOUT_PAD]         # (1, 128)
    h3_slab = h_sc[2 * Bp:(T + 2) * Bp, :]        # super-steps 2..T+1 = timesteps 0..T-1
    out_ref[...] = jnp.dot(h3_slab, w_head, preferred_element_type=f32) + bo


def rnn_stack_pallas(x_btd, w_rec, w_misc):
    """x_btd: (B, T, 2) float32, batch-first (PyTorch convention)."""
    B, T, Din = x_btd.shape
    Bp = ((B + 7) // 8) * 8          # pad batch to a sublane multiple
    S = T + 2                        # wavefront super-steps

    # Build the augmented, time-major input slab:
    #   cols [0:2)  = x[s]            (zero for the 2 trailing phantom steps)
    #   col   2     = 1 (b1 indicator)
    #   col   3     = 1 for s >= 1 (b2 indicator -> keeps h2 carry 0 at s=0)
    #   col   4     = 1 for s >= 2 (b3 indicator -> keeps h3 carry 0 at s<2)
    # Indicators are only set for real batch rows, so padded rows stay exactly 0.
    x_tbd = jnp.transpose(x_btd, (1, 0, 2))                       # (T, B, Din)
    x_aug = jnp.zeros((S, Bp, XCOLS), jnp.float32)
    x_aug = x_aug.at[:T, :B, :Din].set(x_tbd)
    s_ge = lambda k: (jnp.arange(S) >= k).astype(jnp.float32)[:, None]
    x_aug = x_aug.at[:, :B, Din + 0].set(jnp.broadcast_to(s_ge(0), (S, B)))
    x_aug = x_aug.at[:, :B, Din + 1].set(jnp.broadcast_to(s_ge(1), (S, B)))
    x_aug = x_aug.at[:, :B, Din + 2].set(jnp.broadcast_to(s_ge(2), (S, B)))
    x_flat = x_aug.reshape(S * Bp, XCOLS)

    vmem = pl.BlockSpec(memory_space=pltpu.MemorySpace.VMEM)
    kernel = functools.partial(_rnn_stack_kernel, T=T, Bp=Bp)

    # No grid: the whole problem fits in VMEM and runs in one invocation.
    # (If B grows, add a batch grid axis with dimension_semantics=("parallel",)
    #  so v7x's second TensorCore is used.)
    out_flat = pl.pallas_call(
        kernel,
        out_shape=jax.ShapeDtypeStruct((T * Bp, NOUT_PAD), jnp.float32),
        in_specs=[vmem, vmem, vmem],
        out_specs=vmem,
        scratch_shapes=[
            pltpu.VMEM((S * Bp, WCAT), jnp.float32),   # addend slab u[s]
            pltpu.VMEM((S * Bp, WCAT), jnp.float32),   # h_cat slab (h3 lanes feed the head)
        ],
    )(x_flat, w_rec, w_misc)

    out = out_flat.reshape(T, Bp, NOUT_PAD)[:, :B, :DOUT]         # drop padding
    return jnp.transpose(out, (1, 0, 2))                          # (B, T, 2)


# ----------------------------------------------------------------------------
# Host-side parameter packing (2 buffers total).
# ----------------------------------------------------------------------------
def pack_params(params):
    (wi1, wh1, b1, wi2, wh2, b2, wi3, wh3, b3, wo1, bo1, wo2, bo2) = params

    # Fused wavefront recurrence weight (bf16 MXU operand):
    #   new [h1|h2|h3] = tanh( u + [h1|h2|h3] @ W_rec )
    w_rec = jnp.zeros((WCAT, WCAT), jnp.float32)
    w_rec = w_rec.at[L1:L1 + H1, L1:L1 + H1].set(wh1)   # h1 -> h1
    w_rec = w_rec.at[L1:L1 + H1, L2:L2 + H2].set(wi2)   # h1 -> h2 (layer-2 input proj)
    w_rec = w_rec.at[L2:L2 + H2, L2:L2 + H2].set(wh2)   # h2 -> h2
    w_rec = w_rec.at[L2:L2 + H2, L3:L3 + H3].set(wi3)   # h2 -> h3 (layer-3 input proj)
    w_rec = w_rec.at[L3:L3 + H3, L3:L3 + H3].set(wh3)   # h3 -> h3
    w_rec = w_rec.astype(jnp.bfloat16)

    # Misc pack (f32): rows [0:8) input/bias projection, [8:8+256) composed head,
    # row 8+256 head bias.  All slice offsets are (8,128)-tile aligned.
    w_in = jnp.zeros((XCOLS, WCAT), jnp.float32)
    w_in = w_in.at[0:DIN, L1:L1 + H1].set(wi1)
    w_in = w_in.at[DIN + 0, L1:L1 + H1].set(b1[0])      # b1 (always on)
    w_in = w_in.at[DIN + 1, L2:L2 + H2].set(b2[0])      # b2 (on for s>=1)
    w_in = w_in.at[DIN + 2, L3:L3 + H3].set(b3[0])      # b3 (on for s>=2)

    wo = wo1 @ wo2                                      # (30, 2) composed head
    bo = bo1 @ wo2 + bo2                                # (1, 2)
    w_head = jnp.zeros((WCAT, WCAT), jnp.float32)
    w_head = w_head.at[L3:L3 + H3, 0:DOUT].set(wo)
    bo_row = jnp.zeros((8, WCAT), jnp.float32)
    bo_row = bo_row.at[0, 0:DOUT].set(bo[0])

    w_misc = jnp.concatenate([w_in, w_head, bo_row], axis=0)   # (272, 256)
    return w_rec, w_misc


# ----------------------------------------------------------------------------
# Deterministic parameter init (mimics PyTorch uniform(-1/sqrt(H), 1/sqrt(H)))
# ----------------------------------------------------------------------------
def init_params(key):
    sizes = {
        "rnn1": (DIN, H1),
        "rnn2": (H1, H2),
        "rnn3": (H2, H3),
        "out1": (H3, DMID),
        "out2": (DMID, DOUT),
    }
    keys = jax.random.split(key, 16)
    ki = iter(keys)

    def u(k, shape, bound):
        return jax.random.uniform(k, shape, jnp.float32, -bound, bound)

    params = []
    for name in ("rnn1", "rnn2", "rnn3"):
        din, h = sizes[name]
        bound = 1.0 / jnp.sqrt(h)
        w_ih = u(next(ki), (din, h), bound)
        w_hh = u(next(ki), (h, h), bound)
        # PyTorch has b_ih and b_hh; they only ever appear summed.
        b = u(next(ki), (1, h), bound) + u(next(ki), (1, h), bound)
        params.extend([w_ih, w_hh, b])
    for name in ("out1", "out2"):
        din, dout = sizes[name]
        bound = 1.0 / jnp.sqrt(din)
        w = u(next(ki), (din, dout), bound)
        b = u(next(ki), (1, dout), bound)
        params.extend([w, b])
    return params


# ----------------------------------------------------------------------------
# Pure-JAX reference (sequential, f32) for a sanity check.
# ----------------------------------------------------------------------------
def rnn_stack_ref(x_btd, params):
    (wi1, wh1, b1, wi2, wh2, b2, wi3, wh3, b3, wo1, bo1, wo2, bo2) = params
    B, T, _ = x_btd.shape

    def run_layer(x, wi, wh, b):
        h0 = jnp.zeros((B, wh.shape[0]), jnp.float32)

        def step(h, x_t):
            h = jnp.tanh(x_t @ wi + h @ wh + b)
            return h, h

        _, ys = lax.scan(step, h0, jnp.transpose(x, (1, 0, 2)))
        return jnp.transpose(ys, (1, 0, 2))

    y = run_layer(x_btd, wi1, wh1, b1)
    y = run_layer(y, wi2, wh2, b2)
    y = run_layer(y, wi3, wh3, b3)
    y = y @ wo1 + bo1
    y = y @ wo2 + bo2
    return y


if __name__ == "__main__":
    key = jax.random.PRNGKey(0)
    kx, kp = jax.random.split(key)

    B, T, D = 2, 8, 2                     # batch=2, seq=8, input_size=2
    x = jax.random.normal(kx, (B, T, D), jnp.float32)
    params = init_params(kp)
    w_rec, w_misc = pack_params(params)

    out = rnn_stack_pallas(x, w_rec, w_misc)
    out = jax.block_until_ready(out)

    ref = rnn_stack_ref(x, params)
    assert out.shape == (B, T, 2), out.shape
    # bf16 MXU operands on the recurrence critical path -> relaxed tolerance
    # vs. the f32 reference (per review guidance).
    assert jnp.allclose(out, ref, atol=2e-2, rtol=2e-2), "mismatch vs reference"

    print("KERNEL_OK")
</pallas_src>

<mosaic_0001>
module attributes {stable_mosaic.version = 11 : i64} {
  func.func @_rnn_stack_kernel(%arg0: memref<80x8xf32, #tpu.memory_space<vmem>>, %arg1: memref<256x256xbf16, #tpu.memory_space<vmem>>, %arg2: memref<272x256xf32, #tpu.memory_space<vmem>>, %arg3: memref<64x128xf32, #tpu.memory_space<vmem>>, %arg4: memref<80x256xf32, #tpu.memory_space<vmem>>, %arg5: memref<80x256xf32, #tpu.memory_space<vmem>>) attributes {dimension_semantics = [], scalar_prefetch = 0 : i64, scratch_operands = 2 : i64, tpu.core_type = #tpu.core_type<tc>} {
    %c0 = arith.constant 0 : index
    %c0_0 = arith.constant 0 : index
    %0 = vector.load %arg0[%c0, %c0_0] : memref<80x8xf32, #tpu.memory_space<vmem>>, vector<80x8xf32>
    %c0_1 = arith.constant 0 : index
    %c0_2 = arith.constant 0 : index
    %1 = vector.load %arg2[%c0_1, %c0_2] : memref<272x256xf32, #tpu.memory_space<vmem>>, vector<8x256xf32>
    %cst = arith.constant dense<0.000000e+00> : vector<80x256xf32>
    %2 = tpu.matmul %0, %1, %cst {dimension_numbers = #tpu.dot_dimension_numbers<[1], [0], [0], [1], [0, 0, 1, 1], [], []>} : vector<80x8xf32>, vector<8x256xf32>, vector<80x256xf32> -> vector<80x256xf32>
    %c0_3 = arith.constant 0 : index
    %c0_4 = arith.constant 0 : index
    %3 = vector.load %arg4[%c0_3, %c0_4] : memref<80x256xf32, #tpu.memory_space<vmem>>, vector<80x256xf32>
    tpu.vector_store %arg4[%c0_3, %c0_4], %2 {strides = array<i32>} : memref<80x256xf32, #tpu.memory_space<vmem>>, vector<80x256xf32>,
    %c0_5 = arith.constant 0 : index
    %c0_6 = arith.constant 0 : index
    %4 = vector.load %arg1[%c0_5, %c0_6] : memref<256x256xbf16, #tpu.memory_space<vmem>>, vector<256x256xbf16>
    %cst_7 = arith.constant 0.000000e+00 : bf16
    %5 = vector.broadcast %cst_7 : bf16 to vector<8x256xbf16>
    %c0_i32 = arith.constant 0 : i32
    %c8_i32 = arith.constant 8 : i32
    %6 = arith.muli %c0_i32, %c8_i32 : i32
    %7 = tpu.assume_multiple %6, 8 : i32
    %8 = arith.index_cast %7 : i32 to index
    %c0_8 = arith.constant 0 : index
    %9 = vector.load %arg4[%8, %c0_8] : memref<80x256xf32, #tpu.memory_space<vmem>>, vector<8x256xf32>
    %cst_9 = arith.constant dense<0.000000e+00> : vector<8x256xf32>
    %10 = tpu.matmul %5, %4, %cst_9 {dimension_numbers = #tpu.dot_dimension_numbers<[1], [0], [0], [1], [0, 0, 1, 1], [], []>} : vector<8x256xbf16>, vector<256x256xbf16>, vector<8x256xf32> -> vector<8x256xf32>
    %11 = arith.addf %9, %10 : vector<8x256xf32>
    %12 = math.tanh %11 : vector<8x256xf32>
    %13 = arith.index_cast %7 : i32 to index
    %c0_10 = arith.constant 0 : index
    %14 = vector.load %arg5[%13, %c0_10] : memref<80x256xf32, #tpu.memory_space<vmem>>, vector<8x256xf32>
    tpu.vector_store %arg5[%13, %c0_10], %12 {strides = array<i32>} : memref<80x256xf32, #tpu.memory_space<vmem>>, vector<8x256xf32>,
    %15 = arith.truncf %12 : vector<8x256xf32> to vector<8x256xbf16>
    %c1_i32 = arith.constant 1 : i32
    %c8_i32_11 = arith.constant 8 : i32
    %16 = arith.muli %c1_i32, %c8_i32_11 : i32
    %17 = tpu.assume_multiple %16, 8 : i32
    %18 = arith.index_cast %17 : i32 to index
    %c0_12 = arith.constant 0 : index
    %19 = vector.load %arg4[%18, %c0_12] : memref<80x256xf32, #tpu.memory_space<vmem>>, vector<8x256xf32>
    %cst_13 = arith.constant dense<0.000000e+00> : vector<8x256xf32>
    %20 = tpu.matmul %15, %4, %cst_13 {dimension_numbers = #tpu.dot_dimension_numbers<[1], [0], [0], [1], [0, 0, 1, 1], [], []>} : vector<8x256xbf16>, vector<256x256xbf16>, vector<8x256xf32> -> vector<8x256xf32>
    %21 = arith.addf %19, %20 : vector<8x256xf32>
    %22 = math.tanh %21 : vector<8x256xf32>
    %23 = arith.index_cast %17 : i32 to index
    %c0_14 = arith.constant 0 : index
    %24 = vector.load %arg5[%23, %c0_14] : memref<80x256xf32, #tpu.memory_space<vmem>>, vector<8x256xf32>
    tpu.vector_store %arg5[%23, %c0_14], %22 {strides = array<i32>} : memref<80x256xf32, #tpu.memory_space<vmem>>, vector<8x256xf32>,
    %25 = arith.truncf %22 : vector<8x256xf32> to vector<8x256xbf16>
    %c2_i32 = arith.constant 2 : i32
    %c8_i32_15 = arith.constant 8 : i32
    %26 = arith.muli %c2_i32, %c8_i32_15 : i32
    %27 = tpu.assume_multiple %26, 8 : i32
    %28 = arith.index_cast %27 : i32 to index
    %c0_16 = arith.constant 0 : index
    %29 = vector.load %arg4[%28, %c0_16] : memref<80x256xf32, #tpu.memory_space<vmem>>, vector<8x256xf32>
    %cst_17 = arith.constant dense<0.000000e+00> : vector<8x256xf32>
    %30 = tpu.matmul %25, %4, %cst_17 {dimension_numbers = #tpu.dot_dimension_numbers<[1], [0], [0], [1], [0, 0, 1, 1], [], []>} : vector<8x256xbf16>, vector<256x256xbf16>, vector<8x256xf32> -> vector<8x256xf32>
    %31 = arith.addf %29, %30 : vector<8x256xf32>
    %32 = math.tanh %31 : vector<8x256xf32>
    %33 = arith.index_cast %27 : i32 to index
    %c0_18 = arith.constant 0 : index
    %34 = vector.load %arg5[%33, %c0_18] : memref<80x256xf32, #tpu.memory_space<vmem>>, vector<8x256xf32>
    tpu.vector_store %arg5[%33, %c0_18], %32 {strides = array<i32>} : memref<80x256xf32, #tpu.memory_space<vmem>>, vector<8x256xf32>,
    %35 = arith.truncf %32 : vector<8x256xf32> to vector<8x256xbf16>
    %c3_i32 = arith.constant 3 : i32
    %c8_i32_19 = arith.constant 8 : i32
    %36 = arith.muli %c3_i32, %c8_i32_19 : i32
    %37 = tpu.assume_multiple %36, 8 : i32
    %38 = arith.index_cast %37 : i32 to index
    %c0_20 = arith.constant 0 : index
    %39 = vector.load %arg4[%38, %c0_20] : memref<80x256xf32, #tpu.memory_space<vmem>>, vector<8x256xf32>
    %cst_21 = arith.constant dense<0.000000e+00> : vector<8x256xf32>
    %40 = tpu.matmul %35, %4, %cst_21 {dimension_numbers = #tpu.dot_dimension_numbers<[1], [0], [0], [1], [0, 0, 1, 1], [], []>} : vector<8x256xbf16>, vector<256x256xbf16>, vector<8x256xf32> -> vector<8x256xf32>
    %41 = arith.addf %39, %40 : vector<8x256xf32>
    %42 = math.tanh %41 : vector<8x256xf32>
    %43 = arith.index_cast %37 : i32 to index
    %c0_22 = arith.constant 0 : index
    %44 = vector.load %arg5[%43, %c0_22] : memref<80x256xf32, #tpu.memory_space<vmem>>, vector<8x256xf32>
    tpu.vector_store %arg5[%43, %c0_22], %42 {strides = array<i32>} : memref<80x256xf32, #tpu.memory_space<vmem>>, vector<8x256xf32>,
    %45 = arith.truncf %42 : vector<8x256xf32> to vector<8x256xbf16>
    %c4_i32 = arith.constant 4 : i32
    %c8_i32_23 = arith.constant 8 : i32
    %46 = arith.muli %c4_i32, %c8_i32_23 : i32
    %47 = tpu.assume_multiple %46, 8 : i32
    %48 = arith.index_cast %47 : i32 to index
    %c0_24 = arith.constant 0 : index
    %49 = vector.load %arg4[%48, %c0_24] : memref<80x256xf32, #tpu.memory_space<vmem>>, vector<8x256xf32>
    %cst_25 = arith.constant dense<0.000000e+00> : vector<8x256xf32>
    %50 = tpu.matmul %45, %4, %cst_25 {dimension_numbers = #tpu.dot_dimension_numbers<[1], [0], [0], [1], [0, 0, 1, 1], [], []>} : vector<8x256xbf16>, vector<256x256xbf16>, vector<8x256xf32> -> vector<8x256xf32>
    %51 = arith.addf %49, %50 : vector<8x256xf32>
    %52 = math.tanh %51 : vector<8x256xf32>
    %53 = arith.index_cast %47 : i32 to index
    %c0_26 = arith.constant 0 : index
    %54 = vector.load %arg5[%53, %c0_26] : memref<80x256xf32, #tpu.memory_space<vmem>>, vector<8x256xf32>
    tpu.vector_store %arg5[%53, %c0_26], %52 {strides = array<i32>} : memref<80x256xf32, #tpu.memory_space<vmem>>, vector<8x256xf32>,
    %55 = arith.truncf %52 : vector<8x256xf32> to vector<8x256xbf16>
    %c5_i32 = arith.constant 5 : i32
    %c8_i32_27 = arith.constant 8 : i32
    %56 = arith.muli %c5_i32, %c8_i32_27 : i32
    %57 = tpu.assume_multiple %56, 8 : i32
    %58 = arith.index_cast %57 : i32 to index
    %c0_28 = arith.constant 0 : index
    %59 = vector.load %arg4[%58, %c0_28] : memref<80x256xf32, #tpu.memory_space<vmem>>, vector<8x256xf32>
    %cst_29 = arith.constant dense<0.000000e+00> : vector<8x256xf32>
    %60 = tpu.matmul %55, %4, %cst_29 {dimension_numbers = #tpu.dot_dimension_numbers<[1], [0], [0], [1], [0, 0, 1, 1], [], []>} : vector<8x256xbf16>, vector<256x256xbf16>, vector<8x256xf32> -> vector<8x256xf32>
    %61 = arith.addf %59, %60 : vector<8x256xf32>
    %62 = math.tanh %61 : vector<8x256xf32>
    %63 = arith.index_cast %57 : i32 to index
    %c0_30 = arith.constant 0 : index
    %64 = vector.load %arg5[%63, %c0_30] : memref<80x256xf32, #tpu.memory_space<vmem>>, vector<8x256xf32>
    tpu.vector_store %arg5[%63, %c0_30], %62 {strides = array<i32>} : memref<80x256xf32, #tpu.memory_space<vmem>>, vector<8x256xf32>,
    %65 = arith.truncf %62 : vector<8x256xf32> to vector<8x256xbf16>
    %c6_i32 = arith.constant 6 : i32
    %c8_i32_31 = arith.constant 8 : i32
    %66 = arith.muli %c6_i32, %c8_i32_31 : i32
    %67 = tpu.assume_multiple %66, 8 : i32
    %68 = arith.index_cast %67 : i32 to index
    %c0_32 = arith.constant 0 : index
    %69 = vector.load %arg4[%68, %c0_32] : memref<80x256xf32, #tpu.memory_space<vmem>>, vector<8x256xf32>
    %cst_33 = arith.constant dense<0.000000e+00> : vector<8x256xf32>
    %70 = tpu.matmul %65, %4, %cst_33 {dimension_numbers = #tpu.dot_dimension_numbers<[1], [0], [0], [1], [0, 0, 1, 1], [], []>} : vector<8x256xbf16>, vector<256x256xbf16>, vector<8x256xf32> -> vector<8x256xf32>
    %71 = arith.addf %69, %70 : vector<8x256xf32>
    %72 = math.tanh %71 : vector<8x256xf32>
    %73 = arith.index_cast %67 : i32 to index
    %c0_34 = arith.constant 0 : index
    %74 = vector.load %arg5[%73, %c0_34] : memref<80x256xf32, #tpu.memory_space<vmem>>, vector<8x256xf32>
    tpu.vector_store %arg5[%73, %c0_34], %72 {strides = array<i32>} : memref<80x256xf32, #tpu.memory_space<vmem>>, vector<8x256xf32>,
    %75 = arith.truncf %72 : vector<8x256xf32> to vector<8x256xbf16>
    %c7_i32 = arith.constant 7 : i32
    %c8_i32_35 = arith.constant 8 : i32
    %76 = arith.muli %c7_i32, %c8_i32_35 : i32
    %77 = tpu.assume_multiple %76, 8 : i32
    %78 = arith.index_cast %77 : i32 to index
    %c0_36 = arith.constant 0 : index
    %79 = vector.load %arg4[%78, %c0_36] : memref<80x256xf32, #tpu.memory_space<vmem>>, vector<8x256xf32>
    %cst_37 = arith.constant dense<0.000000e+00> : vector<8x256xf32>
    %80 = tpu.matmul %75, %4, %cst_37 {dimension_numbers = #tpu.dot_dimension_numbers<[1], [0], [0], [1], [0, 0, 1, 1], [], []>} : vector<8x256xbf16>, vector<256x256xbf16>, vector<8x256xf32> -> vector<8x256xf32>
    %81 = arith.addf %79, %80 : vector<8x256xf32>
    %82 = math.tanh %81 : vector<8x256xf32>
    %83 = arith.index_cast %77 : i32 to index
    %c0_38 = arith.constant 0 : index
    %84 = vector.load %arg5[%83, %c0_38] : memref<80x256xf32, #tpu.memory_space<vmem>>, vector<8x256xf32>
    tpu.vector_store %arg5[%83, %c0_38], %82 {strides = array<i32>} : memref<80x256xf32, #tpu.memory_space<vmem>>, vector<8x256xf32>,
    %85 = arith.truncf %82 : vector<8x256xf32> to vector<8x256xbf16>
    %c8_i32_39 = arith.constant 8 : i32
    %c8_i32_40 = arith.constant 8 : i32
    %86 = arith.muli %c8_i32_39, %c8_i32_40 : i32
    %87 = tpu.assume_multiple %86, 8 : i32
    %88 = arith.index_cast %87 : i32 to index
    %c0_41 = arith.constant 0 : index
    %89 = vector.load %arg4[%88, %c0_41] : memref<80x256xf32, #tpu.memory_space<vmem>>, vector<8x256xf32>
    %cst_42 = arith.constant dense<0.000000e+00> : vector<8x256xf32>
    %90 = tpu.matmul %85, %4, %cst_42 {dimension_numbers = #tpu.dot_dimension_numbers<[1], [0], [0], [1], [0, 0, 1, 1], [], []>} : vector<8x256xbf16>, vector<256x256xbf16>, vector<8x256xf32> -> vector<8x256xf32>
    %91 = arith.addf %89, %90 : vector<8x256xf32>
    %92 = math.tanh %91 : vector<8x256xf32>
    %93 = arith.index_cast %87 : i32 to index
    %c0_43 = arith.constant 0 : index
    %94 = vector.load %arg5[%93, %c0_43] : memref<80x256xf32, #tpu.memory_space<vmem>>, vector<8x256xf32>
    tpu.vector_store %arg5[%93, %c0_43], %92 {strides = array<i32>} : memref<80x256xf32, #tpu.memory_space<vmem>>, vector<8x256xf32>,
    %95 = arith.truncf %92 : vector<8x256xf32> to vector<8x256xbf16>
    %c9_i32 = arith.constant 9 : i32
    %c8_i32_44 = arith.constant 8 : i32
    %96 = arith.muli %c9_i32, %c8_i32_44 : i32
    %97 = tpu.assume_multiple %96, 8 : i32
    %98 = arith.index_cast %97 : i32 to index
    %c0_45 = arith.constant 0 : index
    %99 = vector.load %arg4[%98, %c0_45] : memref<80x256xf32, #tpu.memory_space<vmem>>, vector<8x256xf32>
    %cst_46 = arith.constant dense<0.000000e+00> : vector<8x256xf32>
    %100 = tpu.matmul %95, %4, %cst_46 {dimension_numbers = #tpu.dot_dimension_numbers<[1], [0], [0], [1], [0, 0, 1, 1], [], []>} : vector<8x256xbf16>, vector<256x256xbf16>, vector<8x256xf32> -> vector<8x256xf32>
    %101 = arith.addf %99, %100 : vector<8x256xf32>
    %102 = math.tanh %101 : vector<8x256xf32>
    %103 = arith.index_cast %97 : i32 to index
    %c0_47 = arith.constant 0 : index
    %104 = vector.load %arg5[%103, %c0_47] : memref<80x256xf32, #tpu.memory_space<vmem>>, vector<8x256xf32>
    tpu.vector_store %arg5[%103, %c0_47], %102 {strides = array<i32>} : memref<80x256xf32, #tpu.memory_space<vmem>>, vector<8x256xf32>,
    %105 = arith.truncf %102 : vector<8x256xf32> to vector<8x256xbf16>
    %c10_i32 = arith.constant 10 : i32
    %c8 = arith.constant 8 : index
    %c0_48 = arith.constant 0 : index
    %106 = vector.load %arg2[%c8, %c0_48] : memref<272x256xf32, #tpu.memory_space<vmem>>, vector<256x128xf32>
    %c264 = arith.constant 264 : index
    %c0_49 = arith.constant 0 : index
    %107 = vector.load %arg2[%c264, %c0_49] : memref<272x256xf32, #tpu.memory_space<vmem>>, vector<1x128xf32>
    %c16 = arith.constant 16 : index
    %c0_50 = arith.constant 0 : index
    %108 = vector.load %arg5[%c16, %c0_50] : memref<80x256xf32, #tpu.memory_space<vmem>>, vector<64x256xf32>
    %cst_51 = arith.constant dense<0.000000e+00> : vector<64x128xf32>
    %109 = tpu.matmul %108, %106, %cst_51 {dimension_numbers = #tpu.dot_dimension_numbers<[1], [0], [0], [1], [0, 0, 1, 1], [], []>} : vector<64x256xf32>, vector<256x128xf32>, vector<64x128xf32> -> vector<64x128xf32>
    %110 = vector.broadcast %107 : vector<1x128xf32> to vector<64x128xf32>
    %111 = arith.addf %109, %110 : vector<64x128xf32>
    %c0_52 = arith.constant 0 : index
    %c0_53 = arith.constant 0 : index
    %112 = vector.load %arg3[%c0_52, %c0_53] : memref<64x128xf32, #tpu.memory_space<vmem>>, vector<64x128xf32>
    tpu.vector_store %arg3[%c0_52, %c0_53], %111 {strides = array<i32>} : memref<64x128xf32, #tpu.memory_space<vmem>>, vector<64x128xf32>,
    return
  }
}

</mosaic_0001>

<bundles_post_ra>
// kernel: tpu_custom_call.1
= control target key start
LH: loop header
LB: loop body
LE: loop exit
PB: predicated region body
PF: predicated region fallthrough
CT: control target
= control target key end

     0   :  { %8 = vsyncpa [#allocation5], 0  ;;  %s2195_s0 = inlined_call_operand.vmem [shape: f32[80,8], index: 0, kind: input, shape index: {}]   ;;  %s2196_s1 = inlined_call_operand.hbm [shape: bf16[256,256], index: 1, kind: input, shape index: {}]   ;;  %s2197_s2 = inlined_call_operand.hbm [shape: f32[272,256], index: 2, kind: input, shape index: {}]   ;;  %s2198_s3 = inlined_call_operand.hbm [shape: f32[64,128], index: 3, kind: output, shape index: {}]  }
   0x1   :  { %9 = vsyncpa [#allocation8], 0 }
   0x2   :  { %10 = vsyncpa [#allocation6], 0  ;;  %s1473_s12 = smov [#allocation4]  }
   0x3   :  { %s18_s13 = sshll.u32 %s1473_s12, 4  ;;  %s19_s13 = int_to_ptr.vmem [resolvable:$true] %s18_s13 }
   0x4   :  { %s1415_s14 = scalar_lea.vmem %s19_s13, 4096  ;;  %p1420_p1 = scmp.lt.s32.totalorder %s19_s13, %s19_s13 }
   0x5   :  { %p1416_p0 = scmp.ne.s32.totalorder %s19_s13, %s1415_s14  ;;  %p1421_p2 = scmp.lt.s32.totalorder %s1415_s14, %s1415_s14 }
   0x7   :  { %p1422_p3 = por %p1421_p2, %p1420_p1 }
   0x9   :  { %p1423_p4 = pnand %p1422_p3, %p1416_p0 }
   0xb   :  { %1426 = shalt.err (!%p1423_p4)
}
   0xc   :  { %s1474_s15 = smov 128   ;;  %s1475_s16 = smov 8  }
   0xd   :  { %24 = dma.hbm_to_vmem [thread:$0]  %s2196_s1, 4096, %s19_s13, [#allocation5], %s1474_s15, %s1474_s15, %s1475_s16  }
   0xe   :  { %s1476_s19 = smov [#allocation7]  }
   0xf   :  { %s30_s20 = sshll.u32 %s1476_s19, 4  ;;  %s31_s20 = int_to_ptr.vmem [resolvable:$true] %s30_s20 }
  0x10   :  { %s1435_s21 = scalar_lea.vmem %s31_s20, 8704  ;;  %p1440_p6 = scmp.lt.s32.totalorder %s31_s20, %s31_s20 }
  0x11   :  { %p1436_p5 = scmp.ne.s32.totalorder %s31_s20, %s1435_s21  ;;  %p1441_p7 = scmp.lt.s32.totalorder %s1435_s21, %s1435_s21 }
  0x13   :  { %p1442_p8 = por %p1441_p7, %p1440_p6 }
  0x15   :  { %p1443_p9 = pnand %p1442_p8, %p1436_p5 }
  0x17   :  { %1446 = shalt.err (!%p1443_p9)
}
  0x18   :  { %s1477_s22 = smov 256   ;;  %s1478_s23 = smov 16  }
  0x19   :  { %36 = dma.hbm_to_vmem [thread:$0]  %s2197_s2, 8704, %s31_s20, [#allocation8], %s1477_s22, %s1477_s22, %s1478_s23  }
  0x1a   :  { %1467 = dma.done.wait [#allocation5], 4096  }
  0x1b   :  { %1468 = vsyncadd [#allocation5], 4294963200 }
  0x1c   :  { %1469 = dma.done.wait [#allocation8], 8704  }
  0x1d   :  { %1470 = vsyncadd [#allocation8], 4294958592  ;;  %v1479_v0 = vmov 0.0   ;;  %v1480_v1 = vmov 0   ;;  %v1513_v2 = vld [vmem:[#allocation4 + $0x74] ss:$8 sps:$4 sm:$0xff]  }
  0x1e   :  { %151 = vmatprep.mubr.f32.mxu0 %v1479_v0  ;;  %461 = vmatprep.mubr.bf16.mxu1 %v1480_v1  ;;  %v1515_v3 = vld [vmem:[#allocation4 + $0x70] ss:$8 sps:$4 sm:$0xff]   ;;  %v1518_v4 = vld [vmem:[#allocation4 + $0x64] ss:$8 sps:$4 sm:$0xff]   ;;  %v1521_v5 = vld [vmem:[#allocation4 + $0x60] ss:$8 sps:$4 sm:$0xff]  }
  0x1f   :  { %429 = vmatprep.subr.bf16.mxu1 %v1513_v2  ;;  %v1524_v6 = vld [vmem:[#allocation4 + $0x54] ss:$8 sps:$4 sm:$0xff]   ;;  %v1527_v7 = vld [vmem:[#allocation4 + $0x50] ss:$8 sps:$4 sm:$0xff]   ;;  %v1530_v8 = vld [vmem:[#allocation4 + $0x44] ss:$8 sps:$4 sm:$0xff]  }
  0x20   :  { %430 = vmatpush1.bf16.msra.mxu1 %v1515_v3  ;;  %v1533_v9 = vld [vmem:[#allocation4 + $0x40] ss:$8 sps:$4 sm:$0xff]   ;;  %v1536_v10 = vld [vmem:[#allocation4 + $0x34] ss:$8 sps:$4 sm:$0xff]   ;;  %v1539_v11 = vld [vmem:[#allocation4 + $0x30] ss:$8 sps:$4 sm:$0xff]  }
  0x21   :  { %431 = vmatprep.subr.bf16.mxu1 %v1518_v4  ;;  %v1542_v12 = vld [vmem:[#allocation4 + $0x24] ss:$8 sps:$4 sm:$0xff]   ;;  %v1545_v13 = vld [vmem:[#allocation4 + $0x20] ss:$8 sps:$4 sm:$0xff]   ;;  %v1547_v14 = vld [vmem:[#allocation4 + $0x14] ss:$8 sps:$4 sm:$0xff]  }
  0x22   :  { %v55_v15 = vld [vmem:[#allocation7 + $0x8] sm:$0xff]  ;;  %vm56_vm0 = vcmask 64512   ;;  %v54_v16 = vld [vmem:[#allocation7] sm:$0xff]  ;;  %v1554_v18 = vld [vmem:[#allocation4 + $0x10] ss:$8 sps:$4 sm:$0xff]  }
  0x23   :  { %117 = vmatprep.subr.mxu0 %v55_v15  ;;  %v44_v17 = vld [vmem:[%s2195_s0] sm:$0xff]  ;;  %v45_v20 = vld [vmem:[%s2195_s0 + $0x8] sm:$0xff]  ;;  %v1572_v22 = vld [vmem:[#allocation4 + $0xf4] ss:$8 sps:$4 sm:$0xff]  }
  0x24   :  { %432 = vmatpush1.bf16.msra.mxu1 %v1521_v5  ;;  %118 = vmatpush1.msra.mxu0 %v54_v16  ;;  %v1558_v19 = vld [vmem:[#allocation4 + $0x4] ss:$8 sps:$4 sm:$0xff]   ;;  %v1568_v21 = vld [vmem:[#allocation4] ss:$8 sps:$4 sm:$0xff]   ;;  %v46_v23 = vld [vmem:[%s2195_s0 + $0x10] sm:$0xff] }
  0x25   :  { %433 = vmatprep.subr.bf16.mxu1 %v1524_v6  ;;  %1180 = vmatmul.mubr.msk.f32.vlgmr.msra.gmra.mxu0 %vm56_vm0, %v44_v17  ;;  %v1581_v24 = vld [vmem:[#allocation4 + $0xf0] ss:$8 sps:$4 sm:$0xff]   ;;  %v1585_v25 = vld [vmem:[#allocation4 + $0xe4] ss:$8 sps:$4 sm:$0xff]   ;;  %v1594_v27 = vld [vmem:[#allocation4 + $0xe0] ss:$8 sps:$4 sm:$0xff]  }
  0x26   :  { %485 = vmatprep.subr.bf16.mxu0 %v1513_v2  ;;  %157 = vmatprep.mubr.f32.mxu0 %v1479_v0  ;;  %v47_v26 = vld [vmem:[%s2195_s0 + $0x18] sm:$0xff]  ;;  %v48_v29 = vld [vmem:[%s2195_s0 + $0x20] sm:$0xff]  ;;  %v49_v41 = vld [vmem:[%s2195_s0 + $0x28] sm:$0xff] }
  0x27   :  { %486 = vmatpush1.bf16.msra.mxu0 %v1515_v3  ;;  %v1598_v28 = vld [vmem:[#allocation4 + $0xd4] ss:$8 sps:$4 sm:$0xff]   ;;  %v1607_v30 = vld [vmem:[#allocation4 + $0xd0] ss:$8 sps:$4 sm:$0xff]   ;;  %v1611_v31 = vld [vmem:[#allocation4 + $0xc4] ss:$8 sps:$4 sm:$0xff]  }
  0x28   :  { %434 = vmatpush1.bf16.msra.mxu1 %v1527_v7  ;;  %487 = vmatprep.subr.bf16.mxu0 %v1518_v4  ;;  %v1617_v32 = vld [vmem:[#allocation4 + $0xc0] ss:$8 sps:$4 sm:$0xff]   ;;  %v1620_v33 = vld [vmem:[#allocation4 + $0xb4] ss:$8 sps:$4 sm:$0xff]   ;;  %v1625_v34 = vld [vmem:[#allocation4 + $0xb0] ss:$8 sps:$4 sm:$0xff]  }
  0x29   :  { %435 = vmatprep.subr.bf16.mxu1 %v1530_v8  ;;  %1181 = vmatmul.mubr.msk.f32.gmra.mxu0 %vm56_vm0, %v45_v20  ;;  %v1628_v35 = vld [vmem:[#allocation4 + $0xa4] ss:$8 sps:$4 sm:$0xff]   ;;  %v1633_v36 = vld [vmem:[#allocation4 + $0xa0] ss:$8 sps:$4 sm:$0xff]   ;;  %v1636_v37 = vld [vmem:[#allocation4 + $0x94] ss:$8 sps:$4 sm:$0xff]  }
  0x2a   :  { %163 = vmatprep.mubr.f32.mxu0 %v1479_v0  ;;  %v1641_v38 = vld [vmem:[#allocation4 + $0x90] ss:$8 sps:$4 sm:$0xff]   ;;  %v1644_v39 = vld [vmem:[#allocation4 + $0x84] ss:$8 sps:$4 sm:$0xff]   ;;  %v1649_v40 = vld [vmem:[#allocation4 + $0x80] ss:$8 sps:$4 sm:$0xff]  }
  0x2b   :  { %488 = vmatpush1.bf16.msra.mxu0 %v1521_v5  ;;  %v50_v42 = vld [vmem:[%s2195_s0 + $0x30] sm:$0xff]  ;;  %v51_v43 = vld [vmem:[%s2195_s0 + $0x38] sm:$0xff]  ;;  %v52_v44 = vld [vmem:[%s2195_s0 + $0x40] sm:$0xff] }
  0x2c   :  { %436 = vmatpush1.bf16.msra.mxu1 %v1533_v9  ;;  %489 = vmatprep.subr.bf16.mxu0 %v1524_v6  ;;  %v53_v45 = vld [vmem:[%s2195_s0 + $0x48] sm:$0xff]  ;;  %s1481_s0 = smov [#allocation9]  }
  0x2d   :  { %437 = vmatprep.subr.bf16.mxu1 %v1536_v10  ;;  %1182 = vmatmul.mubr.msk.f32.gmra.mxu0 %vm56_vm0, %v46_v23  ;;  %s1149_s19 = sshll.u32 %s1481_s0, 4  ;;  %s1150_s19 = int_to_ptr.vmem [resolvable:$true] %s1149_s19 }
  0x2e   :  { %169 = vmatprep.mubr.f32.mxu0 %v1479_v0  ;;  %s1447_s20 = scalar_lea.vmem %s1150_s19, 1024  ;;  %p1452_p11 = scmp.lt.s32.totalorder %s1150_s19, %s1150_s19 }
  0x2f   :  { %490 = vmatpush1.bf16.msra.mxu0 %v1527_v7  ;;  %p1448_p10 = scmp.ne.s32.totalorder %s1150_s19, %s1447_s20  ;;  %p1453_p12 = scmp.lt.s32.totalorder %s1447_s20, %s1447_s20 }
  0x30   :  { %438 = vmatpush1.bf16.msra.mxu1 %v1539_v11  ;;  %491 = vmatprep.subr.bf16.mxu0 %v1530_v8 }
  0x31   :  { %439 = vmatprep.subr.bf16.mxu1 %v1542_v12  ;;  %1183 = vmatmul.mubr.msk.f32.gmra.mxu0 %vm56_vm0, %v47_v26  ;;  %p1454_p13 = por %p1453_p12, %p1452_p11 }
  0x32   :  { %175 = vmatprep.mubr.f32.mxu0 %v1479_v0 }
  0x33   :  { %492 = vmatpush1.bf16.msra.mxu0 %v1533_v9  ;;  %p1455_p0 = pnand %p1454_p13, %p1448_p10 }
  0x34   :  { %440 = vmatpush1.bf16.msra.mxu1 %v1545_v13  ;;  %493 = vmatprep.subr.bf16.mxu0 %v1536_v10 }
  0x35   :  { %441 = vmatprep.subr.bf16.mxu1 %v1547_v14  ;;  %1184 = vmatmul.mubr.msk.f32.gmra.mxu0 %vm56_vm0, %v48_v29 }
  0x36   :  { %181 = vmatprep.mubr.f32.mxu0 %v1479_v0 }
  0x37   :  { %494 = vmatpush1.bf16.msra.mxu0 %v1539_v11 }
  0x38   :  { %442 = vmatpush1.bf16.msra.mxu1 %v1554_v18  ;;  %495 = vmatprep.subr.bf16.mxu0 %v1542_v12 }
  0x39   :  { %443 = vmatprep.subr.bf16.mxu1 %v1558_v19  ;;  %1185 = vmatmul.mubr.msk.f32.gmra.mxu0 %vm56_vm0, %v49_v41 }
  0x3a   :  { %187 = vmatprep.mubr.f32.mxu0 %v1479_v0 }
  0x3b   :  { %496 = vmatpush1.bf16.msra.mxu0 %v1545_v13 }
  0x3c   :  { %444 = vmatpush1.bf16.msra.mxu1 %v1568_v21  ;;  %497 = vmatprep.subr.bf16.mxu0 %v1547_v14 }
  0x3d   :  { %445 = vmatprep.subr.bf16.mxu1 %v1572_v22  ;;  %1186 = vmatmul.mubr.msk.f32.gmra.mxu0 %vm56_vm0, %v50_v42 }
  0x3e   :  { %193 = vmatprep.mubr.f32.mxu0 %v1479_v0 }
  0x3f   :  { %498 = vmatpush1.bf16.msra.mxu0 %v1554_v18 }
  0x40   :  { %446 = vmatpush2.bf16.msra.mxu1 %v1581_v24  ;;  %499 = vmatprep.subr.bf16.mxu0 %v1558_v19 }
  0x41   :  { %447 = vmatprep.subr.bf16.mxu1 %v1585_v25  ;;  %1187 = vmatmul.mubr.msk.f32.gmra.mxu0 %vm56_vm0, %v51_v43 }
  0x42   :  { %199 = vmatprep.mubr.f32.mxu0 %v1479_v0 }
  0x43   :  { %500 = vmatpush1.bf16.msra.mxu0 %v1568_v21 }
  0x44   :  { %448 = vmatpush2.bf16.msra.mxu1 %v1594_v27  ;;  %501 = vmatprep.subr.bf16.mxu0 %v1572_v22 }
  0x45   :  { %449 = vmatprep.subr.bf16.mxu1 %v1598_v28  ;;  %1188 = vmatmul.mubr.msk.f32.gmra.mxu0 %vm56_vm0, %v52_v44 }
  0x46   :  { %205 = vmatprep.mubr.f32.mxu0 %v1479_v0 }
  0x47   :  { %502 = vmatpush2.bf16.msra.mxu0 %v1581_v24 }
  0x48   :  { %450 = vmatpush2.bf16.msra.mxu1 %v1607_v30  ;;  %503 = vmatprep.subr.bf16.mxu0 %v1585_v25 }
  0x49   :  { %451 = vmatprep.subr.bf16.mxu1 %v1611_v31  ;;  %1189 = vmatmul.mubr.msk.f32.gmra.mxu0 %vm56_vm0, %v53_v45 }
  0x4b   :  { %504 = vmatpush2.bf16.msra.mxu0 %v1594_v27 }
  0x4c   :  { %452 = vmatpush2.bf16.msra.mxu1 %v1617_v32  ;;  %505 = vmatprep.subr.bf16.mxu0 %v1598_v28 }
  0x4d   :  { %453 = vmatprep.subr.bf16.mxu1 %v1620_v33 }
  0x4f   :  { %506 = vmatpush2.bf16.msra.mxu0 %v1607_v30 }
  0x50   :  { %454 = vmatpush2.bf16.msra.mxu1 %v1625_v34  ;;  %507 = vmatprep.subr.bf16.mxu0 %v1611_v31 }
  0x51   :  { %455 = vmatprep.subr.bf16.mxu1 %v1628_v35 }
  0x53   :  { %508 = vmatpush2.bf16.msra.mxu0 %v1617_v32 }
  0x54   :  { %456 = vmatpush2.bf16.msra.mxu1 %v1633_v36  ;;  %509 = vmatprep.subr.bf16.mxu0 %v1620_v33 }
  0x55   :  { %457 = vmatprep.subr.bf16.mxu1 %v1636_v37 }
  0x57   :  { %510 = vmatpush2.bf16.msra.mxu0 %v1625_v34 }
  0x58   :  { %458 = vmatpush2.bf16.msra.mxu1 %v1641_v38  ;;  %511 = vmatprep.subr.bf16.mxu0 %v1628_v35 }
  0x59   :  { %459 = vmatprep.subr.bf16.mxu1 %v1644_v39 }
  0x5b   :  { %512 = vmatpush2.bf16.msra.mxu0 %v1633_v36 }
  0x5c   :  { %460 = vmatpush2.bf16.msra.mxu1 %v1649_v40  ;;  %513 = vmatprep.subr.bf16.mxu0 %v1636_v37 }
  0x5d   :  { %541 = vmatprep.subr.bf16.mxu1 %v1513_v2 }
  0x5f   :  { %462 = vmatmul.mubr.bf16.vlgmr.msra.gmra.mxu1 %v1480_v1  ;;  %514 = vmatpush2.bf16.msra.mxu0 %v1641_v38 }
  0x60   :  { %542 = vmatpush1.bf16.msra.mxu1 %v1515_v3  ;;  %515 = vmatprep.subr.bf16.mxu0 %v1644_v39 }
  0x61   :  { %543 = vmatprep.subr.bf16.mxu1 %v1518_v4 }
  0x63   :  { %516 = vmatpush2.bf16.msra.mxu0 %v1649_v40 }
  0x64   :  { %544 = vmatpush1.bf16.msra.mxu1 %v1521_v5  ;;  %597 = vmatprep.subr.bf16.mxu0 %v1513_v2 }
  0x65   :  { %545 = vmatprep.subr.bf16.mxu1 %v1524_v6 }
  0x68   :  { %546 = vmatpush1.bf16.msra.mxu1 %v1527_v7 }
  0x69   :  { %547 = vmatprep.subr.bf16.mxu1 %v1530_v8 }
  0x6c   :  { %548 = vmatpush1.bf16.msra.mxu1 %v1533_v9 }
  0x6d   :  { %549 = vmatprep.subr.bf16.mxu1 %v1536_v10 }
  0x70   :  { %550 = vmatpush1.bf16.msra.mxu1 %v1539_v11 }
  0x71   :  { %551 = vmatprep.subr.bf16.mxu1 %v1542_v12 }
  0x74   :  { %552 = vmatpush1.bf16.msra.mxu1 %v1545_v13 }
  0x75   :  { %553 = vmatprep.subr.bf16.mxu1 %v1547_v14 }
  0x78   :  { %554 = vmatpush1.bf16.msra.mxu1 %v1554_v18 }
  0x79   :  { %555 = vmatprep.subr.bf16.mxu1 %v1558_v19 }
  0x7c   :  { %556 = vmatpush1.bf16.msra.mxu1 %v1568_v21 }
  0x7d   :  { %557 = vmatprep.subr.bf16.mxu1 %v1572_v22 }
  0x80   :  { %558 = vmatpush2.bf16.msra.mxu1 %v1581_v24 }
  0x81   :  { %559 = vmatprep.subr.bf16.mxu1 %v1585_v25 }
  0x84   :  { %560 = vmatpush2.bf16.msra.mxu1 %v1594_v27 }
  0x85   :  { %561 = vmatprep.subr.bf16.mxu1 %v1598_v28 }
  0x88   :  { %562 = vmatpush2.bf16.msra.mxu1 %v1607_v30 }
  0x89   :  { %563 = vmatprep.subr.bf16.mxu1 %v1611_v31 }
  0x8c   :  { %564 = vmatpush2.bf16.msra.mxu1 %v1617_v32 }
  0x8d   :  { %565 = vmatprep.subr.bf16.mxu1 %v1620_v33 }
  0x90   :  { %566 = vmatpush2.bf16.msra.mxu1 %v1625_v34 }
  0x91   :  { %567 = vmatprep.subr.bf16.mxu1 %v1628_v35 }
  0x94   :  { %568 = vmatpush2.bf16.msra.mxu1 %v1633_v36 }
  0x95   :  { %569 = vmatprep.subr.bf16.mxu1 %v1636_v37 }
  0x98   :  { %570 = vmatpush2.bf16.msra.mxu1 %v1641_v38 }
  0x99   :  { %571 = vmatprep.subr.bf16.mxu1 %v1644_v39 }
  0x9c   :  { %572 = vmatpush2.bf16.msra.mxu1 %v1649_v40 }
  0x9d   :  { %653 = vmatprep.subr.bf16.mxu1 %v1513_v2 }
  0xe5   :  { %v153_v46 = vpop.f32.mrf.mxu0 }
  0xe7   :  { %v155_v49 = vpop.f32.mrf.mxu0 }
  0xe9   :  { %v159_v58 = vpop.f32.mrf.mxu0 }
  0xeb   :  { %v161_v59 = vpop.f32.mrf.mxu0 }
  0xed   :  { %v1757_v60 = vpop.f32.mrf.mxu0 }
  0xef   :  { %v1759_v61 = vpop.f32.mrf.mxu0 }
  0xf1   :  { %v1761_v62 = vpop.f32.mrf.mxu0 }
  0xf3   :  { %v1763_v63 = vpop.f32.mrf.mxu0 }
  0xf5   :  { %v1765_v0 = vpop.f32.mrf.mxu0 }
  0xf7   :  { %v1767_v1 = vpop.f32.mrf.mxu0 }
  0xf9   :  { %v1769_v15 = vpop.f32.mrf.mxu0 }
  0xfb   :  { %v1771_v16 = vpop.f32.mrf.mxu0 }
  0xfd   :  { %v1773_v17 = vpop.f32.mrf.mxu0 }
  0xff   :  { %v1775_v20 = vpop.f32.mrf.mxu0 }
 0x101   :  { %v1777_v23 = vpop.f32.mrf.mxu0 }
 0x103   :  { %v1779_v26 = vpop.f32.mrf.mxu0 }
 0x105   :  { %v1781_v29 = vpop.f32.mrf.mxu0 }
 0x107   :  { %v1783_v41 = vpop.f32.mrf.mxu0 }
 0x109   :  { %v1785_v42 = vpop.f32.mrf.mxu0 }
 0x10b   :  { %v1787_v43 = vpop.f32.mrf.mxu0 }
 0x11f   :  { %v463_v47 = vpop.f32.mrf.mxu1 }
 0x120   :  { %v470_v48 = vadd.f32 %v463_v47, %v153_v46 }
 0x121   :  { %v465_v50 = vpop.f32.mrf.mxu1 }
 0x122   :  { %v471_v51 = vadd.f32 %v465_v50, %v155_v49  ;;  %1367 = vtanh.f32 %v470_v48 }
 0x123   :  { %v467_v52 = vpop.f32.mrf.mxu1 }
 0x124   :  { %1369 = vtanh.f32 %v471_v51 }
 0x125   :  { %v468_v53 = vpop.f32.mrf.mxu1 }
 0x12f   :  { %v1368_v54 = vpop.eup %1367 }
 0x130   :  { %v478_v57 = vpack.c.bf16 %v1368_v54, %v1368_v54 }
 0x131   :  { %v1370_v55 = vpop.eup %1369 }
 0x132   :  { %v479_v56 = vpack.c.bf16 %v1370_v55, %v1370_v55 }
 0x134   :  { %517 = vmatprep.mubr.bf16.mxu0 %v479_v56 }
 0x135   :  { %518 = vmatmul.mubr.bf16.vlgmr.msra.gmra.mxu0 %v478_v57 }
 0x136   :  { %598 = vmatpush1.bf16.msra.mxu0 %v1515_v3 }
 0x137   :  { %599 = vmatprep.subr.bf16.mxu0 %v1518_v4 }
 0x13a   :  { %600 = vmatpush1.bf16.msra.mxu0 %v1521_v5 }
 0x13b   :  { %601 = vmatprep.subr.bf16.mxu0 %v1524_v6 }
 0x13e   :  { %602 = vmatpush1.bf16.msra.mxu0 %v1527_v7 }
 0x13f   :  { %603 = vmatprep.subr.bf16.mxu0 %v1530_v8 }
 0x142   :  { %604 = vmatpush1.bf16.msra.mxu0 %v1533_v9 }
 0x143   :  { %605 = vmatprep.subr.bf16.mxu0 %v1536_v10 }
 0x146   :  { %606 = vmatpush1.bf16.msra.mxu0 %v1539_v11 }
 0x147   :  { %607 = vmatprep.subr.bf16.mxu0 %v1542_v12 }
 0x14a   :  { %608 = vmatpush1.bf16.msra.mxu0 %v1545_v13 }
 0x14b   :  { %609 = vmatprep.subr.bf16.mxu0 %v1547_v14 }
 0x14e   :  { %610 = vmatpush1.bf16.msra.mxu0 %v1554_v18 }
 0x14f   :  { %611 = vmatprep.subr.bf16.mxu0 %v1558_v19 }
 0x152   :  { %612 = vmatpush1.bf16.msra.mxu0 %v1568_v21 }
 0x153   :  { %613 = vmatprep.subr.bf16.mxu0 %v1572_v22 }
 0x156   :  { %614 = vmatpush2.bf16.msra.mxu0 %v1581_v24 }
 0x157   :  { %615 = vmatprep.subr.bf16.mxu0 %v1585_v25 }
 0x15a   :  { %616 = vmatpush2.bf16.msra.mxu0 %v1594_v27 }
 0x15b   :  { %617 = vmatprep.subr.bf16.mxu0 %v1598_v28 }
 0x15e   :  { %618 = vmatpush2.bf16.msra.mxu0 %v1607_v30 }
 0x15f   :  { %619 = vmatprep.subr.bf16.mxu0 %v1611_v31 }
 0x162   :  { %620 = vmatpush2.bf16.msra.mxu0 %v1617_v32 }
 0x163   :  { %621 = vmatprep.subr.bf16.mxu0 %v1620_v33 }
 0x166   :  { %622 = vmatpush2.bf16.msra.mxu0 %v1625_v34 }
 0x167   :  { %623 = vmatprep.subr.bf16.mxu0 %v1628_v35 }
 0x16a   :  { %624 = vmatpush2.bf16.msra.mxu0 %v1633_v36 }
 0x16b   :  { %625 = vmatprep.subr.bf16.mxu0 %v1636_v37 }
 0x16e   :  { %626 = vmatpush2.bf16.msra.mxu0 %v1641_v38 }
 0x16f   :  { %627 = vmatprep.subr.bf16.mxu0 %v1644_v39 }
 0x172   :  { %628 = vmatpush2.bf16.msra.mxu0 %v1649_v40 }
 0x173   :  { %709 = vmatprep.subr.bf16.mxu0 %v1513_v2 }
 0x1f5   :  { %v519_v44 = vpop.f32.mrf.mxu0 }
 0x1f6   :  { %v526_v45 = vadd.f32 %v519_v44, %v159_v58 }
 0x1f7   :  { %v521_v46 = vpop.f32.mrf.mxu0 }
 0x1f8   :  { %v527_v47 = vadd.f32 %v521_v46, %v161_v59  ;;  %1371 = vtanh.f32 %v526_v45 }
 0x1f9   :  { %v523_v48 = vpop.f32.mrf.mxu0 }
 0x1fa   :  { %1373 = vtanh.f32 %v527_v47 }
 0x1fb   :  { %v524_v49 = vpop.f32.mrf.mxu0 }
 0x205   :  { %v1372_v50 = vpop.eup %1371 }
 0x206   :  { %v534_v53 = vpack.c.bf16 %v1372_v50, %v1372_v50 }
 0x207   :  { %v1374_v51 = vpop.eup %1373 }
 0x208   :  { %v535_v52 = vpack.c.bf16 %v1374_v51, %v1374_v51 }
 0x20a   :  { %573 = vmatprep.mubr.bf16.mxu1 %v535_v52 }
 0x20b   :  { %574 = vmatmul.mubr.bf16.vlgmr.msra.gmra.mxu1 %v534_v53 }
 0x20c   :  { %654 = vmatpush1.bf16.msra.mxu1 %v1515_v3 }
 0x20d   :  { %655 = vmatprep.subr.bf16.mxu1 %v1518_v4 }
 0x210   :  { %656 = vmatpush1.bf16.msra.mxu1 %v1521_v5 }
 0x211   :  { %657 = vmatprep.subr.bf16.mxu1 %v1524_v6 }
 0x214   :  { %658 = vmatpush1.bf16.msra.mxu1 %v1527_v7 }
 0x215   :  { %659 = vmatprep.subr.bf16.mxu1 %v1530_v8 }
 0x218   :  { %660 = vmatpush1.bf16.msra.mxu1 %v1533_v9 }
 0x219   :  { %661 = vmatprep.subr.bf16.mxu1 %v1536_v10 }
 0x21c   :  { %662 = vmatpush1.bf16.msra.mxu1 %v1539_v11 }
 0x21d   :  { %663 = vmatprep.subr.bf16.mxu1 %v1542_v12 }
 0x220   :  { %664 = vmatpush1.bf16.msra.mxu1 %v1545_v13 }
 0x221   :  { %665 = vmatprep.subr.bf16.mxu1 %v1547_v14 }
 0x224   :  { %666 = vmatpush1.bf16.msra.mxu1 %v1554_v18 }
 0x225   :  { %667 = vmatprep.subr.bf16.mxu1 %v1558_v19 }
 0x228   :  { %668 = vmatpush1.bf16.msra.mxu1 %v1568_v21 }
 0x229   :  { %669 = vmatprep.subr.bf16.mxu1 %v1572_v22 }
 0x22c   :  { %670 = vmatpush2.bf16.msra.mxu1 %v1581_v24 }
 0x22d   :  { %671 = vmatprep.subr.bf16.mxu1 %v1585_v25 }
 0x230   :  { %672 = vmatpush2.bf16.msra.mxu1 %v1594_v27 }
 0x231   :  { %673 = vmatprep.subr.bf16.mxu1 %v1598_v28 }
 0x234   :  { %674 = vmatpush2.bf16.msra.mxu1 %v1607_v30 }
 0x235   :  { %675 = vmatprep.subr.bf16.mxu1 %v1611_v31 }
 0x238   :  { %676 = vmatpush2.bf16.msra.mxu1 %v1617_v32 }
 0x239   :  { %677 = vmatprep.subr.bf16.mxu1 %v1620_v33 }
 0x23c   :  { %678 = vmatpush2.bf16.msra.mxu1 %v1625_v34 }
 0x23d   :  { %679 = vmatprep.subr.bf16.mxu1 %v1628_v35 }
 0x240   :  { %680 = vmatpush2.bf16.msra.mxu1 %v1633_v36 }
 0x241   :  { %681 = vmatprep.subr.bf16.mxu1 %v1636_v37 }
 0x244   :  { %682 = vmatpush2.bf16.msra.mxu1 %v1641_v38 }
 0x245   :  { %683 = vmatprep.subr.bf16.mxu1 %v1644_v39 }
 0x248   :  { %684 = vmatpush2.bf16.msra.mxu1 %v1649_v40 }
 0x249   :  { %765 = vmatprep.subr.bf16.mxu1 %v1513_v2 }
 0x2cb   :  { %v575_v54 = vpop.f32.mrf.mxu1 }
 0x2cc   :  { %v582_v55 = vadd.f32 %v575_v54, %v1757_v60 }
 0x2cd   :  { %v577_v56 = vpop.f32.mrf.mxu1 }
 0x2ce   :  { %v583_v57 = vadd.f32 %v577_v56, %v1759_v61  ;;  %1375 = vtanh.f32 %v582_v55 }
 0x2cf   :  { %v579_v58 = vpop.f32.mrf.mxu1 }
 0x2d0   :  { %1377 = vtanh.f32 %v583_v57 }
 0x2d1   :  { %v580_v59 = vpop.f32.mrf.mxu1 }
 0x2db   :  { %v1823_v44 = vpop.eup %1375 }
 0x2dc   :  { %v590_v47 = vpack.c.bf16 %v1823_v44, %v1823_v44 }
 0x2dd   :  { %v1825_v45 = vpop.eup %1377 }
 0x2de   :  { %v591_v46 = vpack.c.bf16 %v1825_v45, %v1825_v45 }
 0x2e0   :  { %629 = vmatprep.mubr.bf16.mxu0 %v591_v46 }
 0x2e1   :  { %630 = vmatmul.mubr.bf16.vlgmr.msra.gmra.mxu0 %v590_v47 }
 0x2e2   :  { %710 = vmatpush1.bf16.msra.mxu0 %v1515_v3 }
 0x2e3   :  { %711 = vmatprep.subr.bf16.mxu0 %v1518_v4 }
 0x2e6   :  { %712 = vmatpush1.bf16.msra.mxu0 %v1521_v5 }
 0x2e7   :  { %713 = vmatprep.subr.bf16.mxu0 %v1524_v6 }
 0x2ea   :  { %714 = vmatpush1.bf16.msra.mxu0 %v1527_v7 }
 0x2eb   :  { %715 = vmatprep.subr.bf16.mxu0 %v1530_v8 }
 0x2ee   :  { %716 = vmatpush1.bf16.msra.mxu0 %v1533_v9 }
 0x2ef   :  { %717 = vmatprep.subr.bf16.mxu0 %v1536_v10 }
 0x2f2   :  { %718 = vmatpush1.bf16.msra.mxu0 %v1539_v11 }
 0x2f3   :  { %719 = vmatprep.subr.bf16.mxu0 %v1542_v12 }
 0x2f6   :  { %720 = vmatpush1.bf16.msra.mxu0 %v1545_v13 }
 0x2f7   :  { %721 = vmatprep.subr.bf16.mxu0 %v1547_v14 }
 0x2fa   :  { %722 = vmatpush1.bf16.msra.mxu0 %v1554_v18 }
 0x2fb   :  { %723 = vmatprep.subr.bf16.mxu0 %v1558_v19 }
 0x2fe   :  { %724 = vmatpush1.bf16.msra.mxu0 %v1568_v21 }
 0x2ff   :  { %725 = vmatprep.subr.bf16.mxu0 %v1572_v22 }
 0x302   :  { %726 = vmatpush2.bf16.msra.mxu0 %v1581_v24 }
 0x303   :  { %727 = vmatprep.subr.bf16.mxu0 %v1585_v25 }
 0x306   :  { %728 = vmatpush2.bf16.msra.mxu0 %v1594_v27 }
 0x307   :  { %729 = vmatprep.subr.bf16.mxu0 %v1598_v28 }
 0x30a   :  { %730 = vmatpush2.bf16.msra.mxu0 %v1607_v30 }
 0x30b   :  { %731 = vmatprep.subr.bf16.mxu0 %v1611_v31 }
 0x30e   :  { %732 = vmatpush2.bf16.msra.mxu0 %v1617_v32 }
 0x30f   :  { %733 = vmatprep.subr.bf16.mxu0 %v1620_v33 }
 0x312   :  { %734 = vmatpush2.bf16.msra.mxu0 %v1625_v34 }
 0x313   :  { %735 = vmatprep.subr.bf16.mxu0 %v1628_v35 }
 0x316   :  { %736 = vmatpush2.bf16.msra.mxu0 %v1633_v36 }
 0x317   :  { %737 = vmatprep.subr.bf16.mxu0 %v1636_v37 }
 0x31a   :  { %738 = vmatpush2.bf16.msra.mxu0 %v1641_v38 }
 0x31b   :  { %739 = vmatprep.subr.bf16.mxu0 %v1644_v39 }
 0x31e   :  { %740 = vmatpush2.bf16.msra.mxu0 %v1649_v40 }
 0x31f   :  { %821 = vmatprep.subr.bf16.mxu0 %v1513_v2 }
 0x3a1   :  { %v631_v60 = vpop.f32.mrf.mxu0 }
 0x3a2   :  { %v638_v61 = vadd.f32 %v631_v60, %v1761_v62 }
 0x3a3   :  { %v633_v48 = vpop.f32.mrf.mxu0 }
 0x3a4   :  { %v639_v49 = vadd.f32 %v633_v48, %v1763_v63  ;;  %1379 = vtanh.f32 %v638_v61 }
 0x3a5   :  { %v635_v50 = vpop.f32.mrf.mxu0 }
 0x3a6   :  { %1381 = vtanh.f32 %v639_v49 }
 0x3a7   :  { %v636_v51 = vpop.f32.mrf.mxu0 }
 0x3b1   :  { %v1865_v52 = vpop.eup %1379 }
 0x3b2   :  { %v646_v55 = vpack.c.bf16 %v1865_v52, %v1865_v52 }
 0x3b3   :  { %v1867_v53 = vpop.eup %1381 }
 0x3b4   :  { %v647_v54 = vpack.c.bf16 %v1867_v53, %v1867_v53 }
 0x3b6   :  { %685 = vmatprep.mubr.bf16.mxu1 %v647_v54 }
 0x3b7   :  { %686 = vmatmul.mubr.bf16.vlgmr.msra.gmra.mxu1 %v646_v55 }
 0x3b8   :  { %766 = vmatpush1.bf16.msra.mxu1 %v1515_v3 }
 0x3b9   :  { %767 = vmatprep.subr.bf16.mxu1 %v1518_v4 }
 0x3bc   :  { %768 = vmatpush1.bf16.msra.mxu1 %v1521_v5 }
 0x3bd   :  { %769 = vmatprep.subr.bf16.mxu1 %v1524_v6 }
 0x3c0   :  { %770 = vmatpush1.bf16.msra.mxu1 %v1527_v7 }
 0x3c1   :  { %771 = vmatprep.subr.bf16.mxu1 %v1530_v8 }
 0x3c4   :  { %772 = vmatpush1.bf16.msra.mxu1 %v1533_v9 }
 0x3c5   :  { %773 = vmatprep.subr.bf16.mxu1 %v1536_v10 }
 0x3c8   :  { %774 = vmatpush1.bf16.msra.mxu1 %v1539_v11 }
 0x3c9   :  { %775 = vmatprep.subr.bf16.mxu1 %v1542_v12 }
 0x3cc   :  { %776 = vmatpush1.bf16.msra.mxu1 %v1545_v13 }
 0x3cd   :  { %777 = vmatprep.subr.bf16.mxu1 %v1547_v14 }
 0x3d0   :  { %778 = vmatpush1.bf16.msra.mxu1 %v1554_v18 }
 0x3d1   :  { %779 = vmatprep.subr.bf16.mxu1 %v1558_v19 }
 0x3d4   :  { %780 = vmatpush1.bf16.msra.mxu1 %v1568_v21 }
 0x3d5   :  { %781 = vmatprep.subr.bf16.mxu1 %v1572_v22 }
 0x3d8   :  { %782 = vmatpush2.bf16.msra.mxu1 %v1581_v24 }
 0x3d9   :  { %783 = vmatprep.subr.bf16.mxu1 %v1585_v25 }
 0x3dc   :  { %784 = vmatpush2.bf16.msra.mxu1 %v1594_v27 }
 0x3dd   :  { %785 = vmatprep.subr.bf16.mxu1 %v1598_v28 }
 0x3e0   :  { %786 = vmatpush2.bf16.msra.mxu1 %v1607_v30 }
 0x3e1   :  { %787 = vmatprep.subr.bf16.mxu1 %v1611_v31 }
 0x3e4   :  { %788 = vmatpush2.bf16.msra.mxu1 %v1617_v32 }
 0x3e5   :  { %789 = vmatprep.subr.bf16.mxu1 %v1620_v33 }
 0x3e8   :  { %790 = vmatpush2.bf16.msra.mxu1 %v1625_v34 }
 0x3e9   :  { %791 = vmatprep.subr.bf16.mxu1 %v1628_v35 }
 0x3ec   :  { %792 = vmatpush2.bf16.msra.mxu1 %v1633_v36 }
 0x3ed   :  { %793 = vmatprep.subr.bf16.mxu1 %v1636_v37 }
 0x3f0   :  { %794 = vmatpush2.bf16.msra.mxu1 %v1641_v38 }
 0x3f1   :  { %795 = vmatprep.subr.bf16.mxu1 %v1644_v39 }
 0x3f4   :  { %796 = vmatpush2.bf16.msra.mxu1 %v1649_v40 }
 0x3f5   :  { %877 = vmatprep.subr.bf16.mxu1 %v1513_v2 }
 0x477   :  { %v687_v62 = vpop.f32.mrf.mxu1 }
 0x478   :  { %v694_v63 = vadd.f32 %v687_v62, %v1765_v0 }
 0x479   :  { %v689_v56 = vpop.f32.mrf.mxu1 }
 0x47a   :  { %v695_v57 = vadd.f32 %v689_v56, %v1767_v1  ;;  %1383 = vtanh.f32 %v694_v63 }
 0x47b   :  { %v691_v58 = vpop.f32.mrf.mxu1 }
 0x47c   :  { %1385 = vtanh.f32 %v695_v57 }
 0x47d   :  { %v692_v59 = vpop.f32.mrf.mxu1 }
 0x487   :  { %v1907_v46 = vpop.eup %1383 }
 0x488   :  { %v702_v61 = vpack.c.bf16 %v1907_v46, %v1907_v46 }
 0x489   :  { %v1909_v47 = vpop.eup %1385 }
 0x48a   :  { %v703_v60 = vpack.c.bf16 %v1909_v47, %v1909_v47 }
 0x48c   :  { %741 = vmatprep.mubr.bf16.mxu0 %v703_v60 }
 0x48d   :  { %742 = vmatmul.mubr.bf16.vlgmr.msra.gmra.mxu0 %v702_v61 }
 0x48e   :  { %822 = vmatpush1.bf16.msra.mxu0 %v1515_v3 }
 0x48f   :  { %823 = vmatprep.subr.bf16.mxu0 %v1518_v4 }
 0x492   :  { %824 = vmatpush1.bf16.msra.mxu0 %v1521_v5 }
 0x493   :  { %825 = vmatprep.subr.bf16.mxu0 %v1524_v6 }
 0x496   :  { %826 = vmatpush1.bf16.msra.mxu0 %v1527_v7 }
 0x497   :  { %827 = vmatprep.subr.bf16.mxu0 %v1530_v8 }
 0x49a   :  { %828 = vmatpush1.bf16.msra.mxu0 %v1533_v9 }
 0x49b   :  { %829 = vmatprep.subr.bf16.mxu0 %v1536_v10 }
 0x49e   :  { %830 = vmatpush1.bf16.msra.mxu0 %v1539_v11 }
 0x49f   :  { %831 = vmatprep.subr.bf16.mxu0 %v1542_v12 }
 0x4a2   :  { %832 = vmatpush1.bf16.msra.mxu0 %v1545_v13 }
 0x4a3   :  { %833 = vmatprep.subr.bf16.mxu0 %v1547_v14 }
 0x4a6   :  { %834 = vmatpush1.bf16.msra.mxu0 %v1554_v18 }
 0x4a7   :  { %835 = vmatprep.subr.bf16.mxu0 %v1558_v19 }
 0x4aa   :  { %836 = vmatpush1.bf16.msra.mxu0 %v1568_v21 }
 0x4ab   :  { %837 = vmatprep.subr.bf16.mxu0 %v1572_v22 }
 0x4ae   :  { %838 = vmatpush2.bf16.msra.mxu0 %v1581_v24 }
 0x4af   :  { %839 = vmatprep.subr.bf16.mxu0 %v1585_v25 }
 0x4b2   :  { %840 = vmatpush2.bf16.msra.mxu0 %v1594_v27 }
 0x4b3   :  { %841 = vmatprep.subr.bf16.mxu0 %v1598_v28 }
 0x4b6   :  { %842 = vmatpush2.bf16.msra.mxu0 %v1607_v30 }
 0x4b7   :  { %843 = vmatprep.subr.bf16.mxu0 %v1611_v31 }
 0x4ba   :  { %844 = vmatpush2.bf16.msra.mxu0 %v1617_v32 }
 0x4bb   :  { %845 = vmatprep.subr.bf16.mxu0 %v1620_v33 }
 0x4be   :  { %846 = vmatpush2.bf16.msra.mxu0 %v1625_v34 }
 0x4bf   :  { %847 = vmatprep.subr.bf16.mxu0 %v1628_v35 }
 0x4c2   :  { %848 = vmatpush2.bf16.msra.mxu0 %v1633_v36 }
 0x4c3   :  { %849 = vmatprep.subr.bf16.mxu0 %v1636_v37 }
 0x4c6   :  { %850 = vmatpush2.bf16.msra.mxu0 %v1641_v38 }
 0x4c7   :  { %851 = vmatprep.subr.bf16.mxu0 %v1644_v39 }
 0x4ca   :  { %852 = vmatpush2.bf16.msra.mxu0 %v1649_v40 }
 0x4cb   :  { %933 = vmatprep.subr.bf16.mxu0 %v1513_v2 }
 0x54d   :  { %v743_v0 = vpop.f32.mrf.mxu0 }
 0x54e   :  { %v750_v1 = vadd.f32 %v743_v0, %v1769_v15 }
 0x54f   :  { %v745_v48 = vpop.f32.mrf.mxu0 }
 0x550   :  { %v751_v49 = vadd.f32 %v745_v48, %v1771_v16  ;;  %1387 = vtanh.f32 %v750_v1  ;;  %v2110_v1 = vld [vmem:[#allocation7 + $0x40] sm:$0xff]  ;;  %v2113_v48 = vld [vmem:[#allocation7 + $0x130] sm:$0xff] }
 0x551   :  { %v747_v50 = vpop.f32.mrf.mxu0 }
 0x552   :  { %1389 = vtanh.f32 %v751_v49  ;;  %v2116_v49 = vld [vmem:[#allocation7 + $0x30] sm:$0xff]  ;;  %v2119_v50 = vld [vmem:[#allocation7 + $0x120] sm:$0xff] }
 0x553   :  { %v748_v51 = vpop.f32.mrf.mxu0 }
 0x554   :  { %v2122_v51 = vld [vmem:[#allocation7 + $0x20] sm:$0xff] }
 0x55d   :  { %v1949_v54 = vpop.eup %1387 }
 0x55e   :  { %v758_v2 = vpack.c.bf16 %v1949_v54, %v1949_v54 }
 0x55f   :  { %v1951_v55 = vpop.eup %1389 }
 0x560   :  { %v759_v62 = vpack.c.bf16 %v1951_v55, %v1951_v55 }
 0x562   :  { %797 = vmatprep.mubr.bf16.mxu1 %v759_v62  ;;  %v2128_v62 = vld [vmem:[#allocation7 + $0x10] sm:$0xff] }
 0x563   :  { %798 = vmatmul.mubr.bf16.vlgmr.msra.gmra.mxu1 %v758_v2 }
 0x564   :  { %878 = vmatpush1.bf16.msra.mxu1 %v1515_v3 }
 0x565   :  { %879 = vmatprep.subr.bf16.mxu1 %v1518_v4 }
 0x568   :  { %880 = vmatpush1.bf16.msra.mxu1 %v1521_v5 }
 0x569   :  { %881 = vmatprep.subr.bf16.mxu1 %v1524_v6 }
 0x56c   :  { %882 = vmatpush1.bf16.msra.mxu1 %v1527_v7 }
 0x56d   :  { %883 = vmatprep.subr.bf16.mxu1 %v1530_v8 }
 0x570   :  { %884 = vmatpush1.bf16.msra.mxu1 %v1533_v9 }
 0x571   :  { %885 = vmatprep.subr.bf16.mxu1 %v1536_v10 }
 0x574   :  { %886 = vmatpush1.bf16.msra.mxu1 %v1539_v11 }
 0x575   :  { %887 = vmatprep.subr.bf16.mxu1 %v1542_v12 }
 0x578   :  { %888 = vmatpush1.bf16.msra.mxu1 %v1545_v13 }
 0x579   :  { %889 = vmatprep.subr.bf16.mxu1 %v1547_v14 }
 0x57c   :  { %890 = vmatpush1.bf16.msra.mxu1 %v1554_v18 }
 0x57d   :  { %891 = vmatprep.subr.bf16.mxu1 %v1558_v19 }
 0x580   :  { %892 = vmatpush1.bf16.msra.mxu1 %v1568_v21 }
 0x581   :  { %893 = vmatprep.subr.bf16.mxu1 %v1572_v22 }
 0x584   :  { %894 = vmatpush2.bf16.msra.mxu1 %v1581_v24 }
 0x585   :  { %895 = vmatprep.subr.bf16.mxu1 %v1585_v25 }
 0x588   :  { %896 = vmatpush2.bf16.msra.mxu1 %v1594_v27 }
 0x589   :  { %897 = vmatprep.subr.bf16.mxu1 %v1598_v28 }
 0x58c   :  { %898 = vmatpush2.bf16.msra.mxu1 %v1607_v30 }
 0x58d   :  { %899 = vmatprep.subr.bf16.mxu1 %v1611_v31 }
 0x590   :  { %900 = vmatpush2.bf16.msra.mxu1 %v1617_v32 }
 0x591   :  { %901 = vmatprep.subr.bf16.mxu1 %v1620_v33 }
 0x594   :  { %902 = vmatpush2.bf16.msra.mxu1 %v1625_v34 }
 0x595   :  { %903 = vmatprep.subr.bf16.mxu1 %v1628_v35 }
 0x598   :  { %904 = vmatpush2.bf16.msra.mxu1 %v1633_v36 }
 0x599   :  { %905 = vmatprep.subr.bf16.mxu1 %v1636_v37 }
 0x59c   :  { %906 = vmatpush2.bf16.msra.mxu1 %v1641_v38 }
 0x59d   :  { %907 = vmatprep.subr.bf16.mxu1 %v1644_v39 }
 0x5a0   :  { %908 = vmatpush2.bf16.msra.mxu1 %v1649_v40 }
 0x623   :  { %v799_v15 = vpop.f32.mrf.mxu1 }
 0x624   :  { %v806_v16 = vadd.f32 %v799_v15, %v1773_v17  ;;  %v2098_v17 = vld [vmem:[#allocation7 + $0x60] sm:$0xff] }
 0x625   :  { %v801_v63 = vpop.f32.mrf.mxu1 }
 0x626   :  { %v807_v56 = vadd.f32 %v801_v63, %v1775_v20  ;;  %1391 = vtanh.f32 %v806_v16  ;;  %v2101_v20 = vld [vmem:[#allocation7 + $0x150] sm:$0xff] }
 0x627   :  { %v803_v57 = vpop.f32.mrf.mxu1 }
 0x628   :  { %1393 = vtanh.f32 %v807_v56 }
 0x629   :  { %v804_v58 = vpop.f32.mrf.mxu1 }
 0x633   :  { %v1990_v59 = vpop.eup %1391 }
 0x634   :  { %v814_v0 = vpack.c.bf16 %v1990_v59, %v1990_v59 }
 0x635   :  { %v1992_v60 = vpop.eup %1393 }
 0x636   :  { %v815_v61 = vpack.c.bf16 %v1992_v60, %v1992_v60 }
 0x638   :  { %853 = vmatprep.mubr.bf16.mxu0 %v815_v61 }
 0x639   :  { %854 = vmatmul.mubr.bf16.vlgmr.msra.gmra.mxu0 %v814_v0 }
 0x63a   :  { %934 = vmatpush1.bf16.msra.mxu0 %v1515_v3  ;;  %v1013_v3 = vld [vmem:[#allocation7 + $0x200] sm:$0xff] }
 0x63b   :  { %935 = vmatprep.subr.bf16.mxu0 %v1518_v4  ;;  %1278 = vmatprep.subr.mxu1 %v1013_v3 }
 0x63e   :  { %936 = vmatpush1.bf16.msra.mxu0 %v1521_v5 }
 0x63f   :  { %937 = vmatprep.subr.bf16.mxu0 %v1524_v6 }
 0x642   :  { %938 = vmatpush1.bf16.msra.mxu0 %v1527_v7 }
 0x643   :  { %939 = vmatprep.subr.bf16.mxu0 %v1530_v8 }
 0x646   :  { %940 = vmatpush1.bf16.msra.mxu0 %v1533_v9 }
 0x647   :  { %941 = vmatprep.subr.bf16.mxu0 %v1536_v10 }
 0x64a   :  { %942 = vmatpush1.bf16.msra.mxu0 %v1539_v11 }
 0x64b   :  { %943 = vmatprep.subr.bf16.mxu0 %v1542_v12 }
 0x64e   :  { %944 = vmatpush1.bf16.msra.mxu0 %v1545_v13 }
 0x64f   :  { %945 = vmatprep.subr.bf16.mxu0 %v1547_v14  ;;  %v2039_v14 = vld [vmem:[#allocation7 + $0x100] sm:$0xff] }
 0x652   :  { %946 = vmatpush1.bf16.msra.mxu0 %v1554_v18  ;;  %v2041_v18 = vld [vmem:[#allocation7 + $0x1f0] sm:$0xff] }
 0x653   :  { %947 = vmatprep.subr.bf16.mxu0 %v1558_v19  ;;  %v2043_v19 = vld [vmem:[#allocation7 + $0xf0] sm:$0xff] }
 0x656   :  { %948 = vmatpush1.bf16.msra.mxu0 %v1568_v21  ;;  %v2047_v21 = vld [vmem:[#allocation7 + $0x1e0] sm:$0xff] }
 0x657   :  { %949 = vmatprep.subr.bf16.mxu0 %v1572_v22  ;;  %v2050_v22 = vld [vmem:[#allocation7 + $0xe0] sm:$0xff] }
 0x65a   :  { %950 = vmatpush2.bf16.msra.mxu0 %v1581_v24  ;;  %v2053_v24 = vld [vmem:[#allocation7 + $0x1d0] sm:$0xff] }
 0x65b   :  { %951 = vmatprep.subr.bf16.mxu0 %v1585_v25  ;;  %v2056_v25 = vld [vmem:[#allocation7 + $0xd0] sm:$0xff] }
 0x65e   :  { %952 = vmatpush2.bf16.msra.mxu0 %v1594_v27  ;;  %v2059_v27 = vld [vmem:[#allocation7 + $0x1c0] sm:$0xff] }
 0x65f   :  { %953 = vmatprep.subr.bf16.mxu0 %v1598_v28  ;;  %v2062_v28 = vld [vmem:[#allocation7 + $0xc0] sm:$0xff] }
 0x662   :  { %954 = vmatpush2.bf16.msra.mxu0 %v1607_v30  ;;  %v2065_v30 = vld [vmem:[#allocation7 + $0x1b0] sm:$0xff] }
 0x663   :  { %955 = vmatprep.subr.bf16.mxu0 %v1611_v31  ;;  %v2068_v31 = vld [vmem:[#allocation7 + $0xb0] sm:$0xff] }
 0x666   :  { %956 = vmatpush2.bf16.msra.mxu0 %v1617_v32  ;;  %v2071_v32 = vld [vmem:[#allocation7 + $0x1a0] sm:$0xff] }
 0x667   :  { %957 = vmatprep.subr.bf16.mxu0 %v1620_v33  ;;  %v2074_v33 = vld [vmem:[#allocation7 + $0xa0] sm:$0xff] }
 0x66a   :  { %958 = vmatpush2.bf16.msra.mxu0 %v1625_v34  ;;  %v2077_v34 = vld [vmem:[#allocation7 + $0x190] sm:$0xff] }
 0x66b   :  { %959 = vmatprep.subr.bf16.mxu0 %v1628_v35  ;;  %v2080_v35 = vld [vmem:[#allocation7 + $0x90] sm:$0xff] }
 0x66e   :  { %960 = vmatpush2.bf16.msra.mxu0 %v1633_v36  ;;  %v2083_v36 = vld [vmem:[#allocation7 + $0x180] sm:$0xff] }
 0x66f   :  { %961 = vmatprep.subr.bf16.mxu0 %v1636_v37  ;;  %v2086_v37 = vld [vmem:[#allocation7 + $0x80] sm:$0xff] }
 0x672   :  { %962 = vmatpush2.bf16.msra.mxu0 %v1641_v38  ;;  %v2089_v38 = vld [vmem:[#allocation7 + $0x170] sm:$0xff] }
 0x673   :  { %963 = vmatprep.subr.bf16.mxu0 %v1644_v39  ;;  %v2092_v39 = vld [vmem:[#allocation7 + $0x70] sm:$0xff] }
 0x676   :  { %964 = vmatpush2.bf16.msra.mxu0 %v1649_v40  ;;  %v2095_v40 = vld [vmem:[#allocation7 + $0x160] sm:$0xff] }
 0x677   :  { %1222 = vmatprep.subr.mxu0 %v1013_v3 }
 0x6f9   :  { %v855_v4 = vpop.f32.mrf.mxu0 }
 0x6fa   :  { %v862_v5 = vadd.f32 %v855_v4, %v1777_v23  ;;  %v2104_v23 = vld [vmem:[#allocation7 + $0x50] sm:$0xff] }
 0x6fb   :  { %v857_v6 = vpop.f32.mrf.mxu0 }
 0x6fc   :  { %v863_v7 = vadd.f32 %v857_v6, %v1779_v26  ;;  %1395 = vtanh.f32 %v862_v5  ;;  %v2107_v26 = vld [vmem:[#allocation7 + $0x140] sm:$0xff] }
 0x6fd   :  { %v859_v8 = vpop.f32.mrf.mxu0 }
 0x6fe   :  { %1397 = vtanh.f32 %v863_v7 }
 0x6ff   :  { %v860_v9 = vpop.f32.mrf.mxu0 }
 0x709   :  { %v2031_v10 = vpop.eup %1395 }
 0x70a   :  { %v870_v13 = vpack.c.bf16 %v2031_v10, %v2031_v10 }
 0x70b   :  { %v2033_v11 = vpop.eup %1397 }
 0x70c   :  { %v871_v12 = vpack.c.bf16 %v2033_v11, %v2033_v11 }
 0x70e   :  { %909 = vmatprep.mubr.bf16.mxu1 %v871_v12 }
 0x70f   :  { %910 = vmatmul.mubr.bf16.vlgmr.msra.gmra.mxu1 %v870_v13 }
 0x710   :  { %1294 = vmatpush3.msra.mxu1 %v2039_v14  ;;  %1110 = vmatprep.mubr.f32.mxu1 %v1951_v55  ;;  %v2125_v55 = vld [vmem:[#allocation7 + $0x110] sm:$0xff] }
 0x711   :  { %1279 = vmatprep.subr.mxu1 %v2041_v18 }
 0x712   :  { %1295 = vmatpush3.msra.mxu1 %v2043_v19 }
 0x713   :  { %1280 = vmatprep.subr.mxu1 %v2047_v21 }
 0x714   :  { %1296 = vmatpush3.msra.mxu1 %v2050_v22 }
 0x715   :  { %1281 = vmatprep.subr.mxu1 %v2053_v24 }
 0x716   :  { %1297 = vmatpush3.msra.mxu1 %v2056_v25 }
 0x717   :  { %1282 = vmatprep.subr.mxu1 %v2059_v27 }
 0x718   :  { %1298 = vmatpush3.msra.mxu1 %v2062_v28 }
 0x719   :  { %1283 = vmatprep.subr.mxu1 %v2065_v30 }
 0x71a   :  { %1299 = vmatpush3.msra.mxu1 %v2068_v31 }
 0x71b   :  { %1284 = vmatprep.subr.mxu1 %v2071_v32 }
 0x71c   :  { %1300 = vmatpush3.msra.mxu1 %v2074_v33 }
 0x71d   :  { %1285 = vmatprep.subr.mxu1 %v2077_v34 }
 0x71e   :  { %1301 = vmatpush3.msra.mxu1 %v2080_v35 }
 0x71f   :  { %1286 = vmatprep.subr.mxu1 %v2083_v36 }
 0x720   :  { %1302 = vmatpush3.msra.mxu1 %v2086_v37 }
 0x721   :  { %1287 = vmatprep.subr.mxu1 %v2089_v38 }
 0x722   :  { %1303 = vmatpush3.msra.mxu1 %v2092_v39 }
 0x723   :  { %1288 = vmatprep.subr.mxu1 %v2095_v40 }
 0x724   :  { %1304 = vmatpush3.msra.mxu1 %v2098_v17 }
 0x725   :  { %1289 = vmatprep.subr.mxu1 %v2101_v20 }
 0x726   :  { %1305 = vmatpush3.msra.mxu1 %v2104_v23 }
 0x727   :  { %1290 = vmatprep.subr.mxu1 %v2107_v26 }
 0x728   :  { %1306 = vmatpush3.msra.mxu1 %v2110_v1 }
 0x729   :  { %1291 = vmatprep.subr.mxu1 %v2113_v48 }
 0x72a   :  { %1307 = vmatpush3.msra.mxu1 %v2116_v49 }
 0x72b   :  { %1292 = vmatprep.subr.mxu1 %v2119_v50 }
 0x72c   :  { %1308 = vmatpush3.msra.mxu1 %v2122_v51 }
 0x72d   :  { %1293 = vmatprep.subr.mxu1 %v2125_v55 }
 0x72e   :  { %1309 = vmatpush3.msra.mxu1 %v2128_v62 }
 0x72f   :  { %1111 = vmatmul.mubr.f32.vlgmr.msra.gmra.mxu1 %v1949_v54 }
 0x730   :  { %1115 = vmatprep.mubr.f32.mxu1 %v1992_v60 }
 0x733   :  { %1116 = vmatmul.mubr.f32.gmra.mxu1 %v1990_v59 }
 0x734   :  { %1120 = vmatprep.mubr.f32.mxu1 %v2033_v11 }
 0x737   :  { %1121 = vmatmul.mubr.f32.gmra.mxu1 %v2031_v10 }
 0x7cf   :  { %v911_v2 = vpop.f32.mrf.mxu1 }
 0x7d0   :  { %v918_v15 = vadd.f32 %v911_v2, %v1781_v29 }
 0x7d1   :  { %v913_v16 = vpop.f32.mrf.mxu1 }
 0x7d2   :  { %v919_v63 = vadd.f32 %v913_v16, %v1783_v41  ;;  %1399 = vtanh.f32 %v918_v15  ;;  %v2153_v41 = vld [vmem:[#allocation7 + $0x210] ss:$0 sm:$0xff] }
 0x7d3   :  { %v915_v56 = vpop.f32.mrf.mxu1 }
 0x7d4   :  { %1401 = vtanh.f32 %v919_v63 }
 0x7d5   :  { %v916_v57 = vpop.f32.mrf.mxu1 }
 0x7df   :  { %v1400_v58 = vpop.eup %1399 }
 0x7e0   :  { %v926_v59 = vpack.c.bf16 %v1400_v58, %v1400_v58 }
 0x7e1   :  { %v1402_v54 = vpop.eup %1401 }
 0x7e2   :  { %1125 = vmatprep.mubr.f32.mxu1 %v1402_v54  ;;  %v927_v60 = vpack.c.bf16 %v1402_v54, %v1402_v54 }
 0x7e3   :  { %1126 = vmatmul.mubr.f32.gmra.mxu1 %v1400_v58 }
 0x7e4   :  { %965 = vmatprep.mubr.bf16.mxu0 %v927_v60 }
 0x7e5   :  { %966 = vmatmul.mubr.bf16.vlgmr.msra.gmra.mxu0 %v926_v59 }
 0x7e6   :  { %1223 = vmatpush3.msra.mxu0 %v2039_v14  ;;  %1095 = vmatprep.mubr.f32.mxu0 %v1825_v45 }
 0x7e7   :  { %1224 = vmatprep.subr.mxu0 %v2041_v18 }
 0x7e8   :  { %1225 = vmatpush3.msra.mxu0 %v2043_v19 }
 0x7e9   :  { %1226 = vmatprep.subr.mxu0 %v2047_v21 }
 0x7ea   :  { %1227 = vmatpush3.msra.mxu0 %v2050_v22 }
 0x7eb   :  { %1228 = vmatprep.subr.mxu0 %v2053_v24 }
 0x7ec   :  { %1229 = vmatpush3.msra.mxu0 %v2056_v25 }
 0x7ed   :  { %1230 = vmatprep.subr.mxu0 %v2059_v27 }
 0x7ee   :  { %1231 = vmatpush3.msra.mxu0 %v2062_v28 }
 0x7ef   :  { %1232 = vmatprep.subr.mxu0 %v2065_v30  ;;  %v1263_v29 = vpop.f32.mrf.mxu1 }
 0x7f0   :  { %1233 = vmatpush3.msra.mxu0 %v2068_v31 }
 0x7f1   :  { %1234 = vmatprep.subr.mxu0 %v2071_v32  ;;  %v1264_v45 = vpop.f32.mrf.mxu1 }
 0x7f2   :  { %v1265_v61 = vadd.f32 %v1264_v45, %v1263_v29  ;;  %1235 = vmatpush3.msra.mxu0 %v2074_v33 }
 0x7f3   :  { %1236 = vmatprep.subr.mxu0 %v2077_v34  ;;  %v1266_v0 = vpop.f32.mrf.mxu1 }
 0x7f4   :  { %v1113_v3 = vadd.f32 %v1265_v61, %v2153_v41  ;;  %1237 = vmatpush3.msra.mxu0 %v2080_v35 }
 0x7f5   :  { %1238 = vmatprep.subr.mxu0 %v2083_v36  ;;  %v1267_v4 = vpop.f32.mrf.mxu1 }
 0x7f6   :  { %1139 = vst [vmem:[#allocation9 + $0x18] sm:$0xff] %v1113_v3  ;;  %v1268_v5 = vadd.f32 %v1267_v4, %v1266_v0  ;;  %1239 = vmatpush3.msra.mxu0 %v2086_v37 }
 0x7f7   :  { %1240 = vmatprep.subr.mxu0 %v2089_v38  ;;  %v1269_v6 = vpop.f32.mrf.mxu1 }
 0x7f8   :  { %v1118_v7 = vadd.f32 %v1268_v5, %v2153_v41  ;;  %1241 = vmatpush3.msra.mxu0 %v2092_v39 }
 0x7f9   :  { %1242 = vmatprep.subr.mxu0 %v2095_v40  ;;  %v1270_v8 = vpop.f32.mrf.mxu1 }
 0x7fa   :  { %1140 = vst [vmem:[#allocation9 + $0x20] sm:$0xff] %v1118_v7  ;;  %v1271_v9 = vadd.f32 %v1270_v8, %v1269_v6  ;;  %1243 = vmatpush3.msra.mxu0 %v2098_v17 }
 0x7fb   :  { %1244 = vmatprep.subr.mxu0 %v2101_v20 }
 0x7fc   :  { %v1123_v10 = vadd.f32 %v1271_v9, %v2153_v41  ;;  %1245 = vmatpush3.msra.mxu0 %v2104_v23 }
 0x7fd   :  { %1246 = vmatprep.subr.mxu0 %v2107_v26 }
 0x7fe   :  { %1141 = vst [vmem:[#allocation9 + $0x28] sm:$0xff] %v1123_v10  ;;  %1247 = vmatpush3.msra.mxu0 %v2110_v1 }
 0x7ff   :  { %1248 = vmatprep.subr.mxu0 %v2113_v48 }
 0x800   :  { %1249 = vmatpush3.msra.mxu0 %v2116_v49 }
 0x801   :  { %1250 = vmatprep.subr.mxu0 %v2119_v50 }
 0x802   :  { %1251 = vmatpush3.msra.mxu0 %v2122_v51 }
 0x803   :  { %1252 = vmatprep.subr.mxu0 %v2125_v55 }
 0x804   :  { %1253 = vmatpush3.msra.mxu0 %v2128_v62 }
 0x805   :  { %1096 = vmatmul.mubr.f32.vlgmr.msra.gmra.mxu0 %v1823_v44 }
 0x806   :  { %1100 = vmatprep.mubr.f32.mxu0 %v1867_v53 }
 0x809   :  { %1101 = vmatmul.mubr.f32.gmra.mxu0 %v1865_v52 }
 0x80a   :  { %1105 = vmatprep.mubr.f32.mxu0 %v1909_v47 }
 0x80d   :  { %1106 = vmatmul.mubr.f32.gmra.mxu0 %v1907_v46 }
 0x8a3   :  { %v1272_v11 = vpop.f32.mrf.mxu1 }
 0x8a5   :  { %v967_v12 = vpop.f32.mrf.mxu0  ;;  %v1273_v13 = vpop.f32.mrf.mxu1 }
 0x8a6   :  { %v1274_v14 = vadd.f32 %v1273_v13, %v1272_v11  ;;  %v974_v18 = vadd.f32 %v967_v12, %v1785_v42 }
 0x8a7   :  { %v969_v19 = vpop.f32.mrf.mxu0 }
 0x8a8   :  { %v1128_v21 = vadd.f32 %v1274_v14, %v2153_v41  ;;  %v975_v22 = vadd.f32 %v969_v19, %v1787_v43 }
 0x8a9   :  { %v971_v44 = vpop.f32.mrf.mxu0 }
 0x8aa   :  { %1142 = vst [vmem:[#allocation9 + $0x30] sm:$0xff] %v1128_v21  ;;  %1403 = vtanh.f32 %v975_v22 }
 0x8ab   :  { %1405 = vtanh.f32 %v974_v18  ;;  %v972_v52 = vpop.f32.mrf.mxu0 }
 0x8b7   :  { %v1404_v53 = vpop.eup %1403 }
 0x8b8   :  { %v1406_v47 = vpop.eup %1405  ;;  %1130 = vmatprep.mubr.f32.mxu1 %v1404_v53 }
 0x8b9   :  { %1131 = vmatmul.mubr.f32.gmra.mxu1 %v1406_v47 }
 0x8c5   :  { %v1254_v46 = vpop.f32.mrf.mxu0 }
 0x8c7   :  { %v1255_v24 = vpop.f32.mrf.mxu0 }
 0x8c8   :  { %v1256_v25 = vadd.f32 %v1255_v24, %v1254_v46 }
 0x8c9   :  { %v1257_v27 = vpop.f32.mrf.mxu0 }
 0x8ca   :  { %v1098_v42 = vadd.f32 %v1256_v25, %v2153_v41 }
 0x8cb   :  { %v1258_v28 = vpop.f32.mrf.mxu0 }
 0x8cc   :  { %1136 = vst [vmem:[#allocation9] sm:$0xff] %v1098_v42  ;;  %v1259_v30 = vadd.f32 %v1258_v28, %v1257_v27 }
 0x8cd   :  { %v1260_v31 = vpop.f32.mrf.mxu0 }
 0x8ce   :  { %v1103_v43 = vadd.f32 %v1259_v30, %v2153_v41 }
 0x8cf   :  { %v1261_v32 = vpop.f32.mrf.mxu0 }
 0x8d0   :  { %1137 = vst [vmem:[#allocation9 + $0x8] sm:$0xff] %v1103_v43  ;;  %v1262_v33 = vadd.f32 %v1261_v32, %v1260_v31 }
 0x8d2   :  { %v1108_v34 = vadd.f32 %v1262_v33, %v2153_v41 }
 0x8d4   :  { %1138 = vst [vmem:[#allocation9 + $0x10] sm:$0xff] %v1108_v34 }
 0x979   :  { %v1275_v35 = vpop.f32.mrf.mxu1 }
 0x97b   :  { %v1276_v36 = vpop.f32.mrf.mxu1 }
 0x97c   :  { %v1277_v37 = vadd.f32 %v1276_v36, %v1275_v35 }
 0x97e   :  { %v1133_v38 = vadd.f32 %v1277_v37, %v2153_v41 }
 0x980   :  { %1143 = vst [vmem:[#allocation9 + $0x38] sm:$0xff] %v1133_v38 }
 0x981   :  { %1458 = shalt.err (!%p1455_p0)
}
 0x982   :  { %1155 = dma.vmem_to_hbm [thread:$0]  %s1150_s19, 1024, %s2198_s3, [#allocation6], %s1474_s15, %s1474_s15, %s1475_s16  }
 0x983   :  { %1471 = dma.done.wait [#allocation6], 1024  }
 0x984   :  { %1472 = vsyncadd [#allocation6], 4294966272 }
 0x985   :  { %1159 = vsyncpa [#allocation5], 1 }
 0x986   :  { %1160 = vsyncpa [#allocation8], 1 }
 0x987   :  { %1161 = vsyncpa [#allocation6], 1 }

</bundles_post_ra>
